<compile_context>
chip_gen: v5e
topology: v5e:2x2
jax: 0.10.0
libtpu: 0.0.40
codegen_flags: <defaults>
</compile_context>

<pallas_src>
import math
from functools import partial
from typing import NamedTuple

import jax
import jax.numpy as jnp
from jax.experimental import pallas as pl
from jax.experimental.pallas import tpu as pltpu


class MambaDims(NamedTuple):
    input_dim: int
    mlp_hidden: int
    d_model: int
    d_state: int
    d_conv: int
    d_inner: int
    num_actions: int


def _round_up(x, m):
    return ((x + m - 1) // m) * m


def _sigmoid(v):
    # exp on the EUP + approx reciprocal (vrcp, also EUP) -> stays off the VALU
    return pl.reciprocal(1.0 + jnp.exp(-v), approx=True)


# --------------------------------------------------------------------------
# Fused kernel: input MLP + Mamba block + output head (one batch tile)
# --------------------------------------------------------------------------
def _make_kernel(dims: MambaDims, S: int, TB: int, TBp: int):
    input_dim, mlp_hidden = dims.input_dim, dims.mlp_hidden
    d_state, d_conv, d_inner = dims.d_state, dims.d_conv, dims.d_inner
    LT = S * TB  # rows per block, t-major: row = t*TB + b

    # row offsets inside the packed "small params" slab
    ROW_ALOG = 0
    ROW_CONVW = d_state
    ROW_CONVB = d_state + d_conv
    ROW_DTB = ROW_CONVB + 1
    ROW_D = ROW_DTB + 1

    def kernel(x_ref, p_mlp1_ref, p_mlp2_ref, p_in_ref, p_xp_ref,
               p_small_ref, p_tail_ref, o_ref):
        # ---------------- input MLP (stays in vregs) ----------------------
        x = x_ref[0]                                            # (LT, input_dim)
        w1 = p_mlp1_ref[0:input_dim, :]
        b1 = p_mlp1_ref[input_dim:input_dim + 1, :]
        h = jnp.maximum(jnp.dot(x, w1, preferred_element_type=jnp.float32) + b1, 0.0)
        w2 = p_mlp2_ref[0:mlp_hidden, :]
        b2 = p_mlp2_ref[mlp_hidden:mlp_hidden + 1, :]
        xp = jnp.maximum(jnp.dot(h, w2, preferred_element_type=jnp.float32) + b2, 0.0)

        # ---------------- Mamba in_proj: [x | z] in one matmul ------------
        inz = jnp.dot(xp, p_in_ref[...], preferred_element_type=jnp.float32)  # (LT, 2*d_inner)
        x_in = inz[:, 0:d_inner]
        z_last = inz[LT - TB:LT, d_inner:2 * d_inner]           # (TB, d_inner), last step only

        # ------------- causal depthwise conv1d (pure VPU) -----------------
        # Rows are t-major, so a shift of s timesteps is a shift of s*TB rows:
        # one zero pad at the top + d_conv static slices covers every tap with
        # no masks and never mixes batch elements.
        pad_rows = (d_conv - 1) * TB
        x_padded = jnp.concatenate(
            [jnp.zeros((pad_rows, d_inner), jnp.float32), x_in], axis=0)
        conv = p_small_ref[ROW_CONVB:ROW_CONVB + 1, :]          # conv bias, broadcasts
        for k in range(d_conv):
            tap = p_small_ref[ROW_CONVW + k:ROW_CONVW + k + 1, :]
            conv = conv + x_padded[k * TB:k * TB + LT, :] * tap
        u = conv * _sigmoid(conv)                               # SiLU, (LT, d_inner)
        u_last = u[LT - TB:LT, :]

        # ------------- x_proj: [dt | B | C] in one matmul + softplus ------
        xbc = jnp.dot(u, p_xp_ref[...], preferred_element_type=jnp.float32)   # (LT, xp_pad)
        b_dt = p_small_ref[ROW_DTB:ROW_DTB + 1, :]
        dt_pre = xbc[:, 0:d_inner] + b_dt
        dt = jnp.where(dt_pre > 20.0, dt_pre,
                       jnp.log(1.0 + jnp.exp(jnp.minimum(dt_pre, 20.0))))     # softplus
        Bm = xbc[:, d_inner:d_inner + d_state]                                 # (LT, d_state)
        C_last = xbc[LT - TB:LT, d_inner + d_state:d_inner + 2 * d_state]      # (TB, d_state)

        # ------------- selective scan ------------------------------------
        # Vectorized over the batch tile (each step updates all TB rows, so
        # the serial chain is S, not B*S).  Unrolled over the small d_state
        # axis so every op is a safe 2-D row-/lane-broadcast on the VPU: no
        # per-step MXU outer products and no lane<->sublane relayouts.
        # exp(dt*A) and B*dt*u are hoisted out of the serial t-chain.
        A = -jnp.exp(p_small_ref[ROW_ALOG:ROW_ALOG + d_state, :])              # (d_state, d_inner)
        dtu = dt * u
        y = jnp.zeros((TB, d_inner), jnp.float32)
        for n in range(d_state):
            dA_n = jnp.exp(dt * A[n:n + 1, :])                  # (LT, d_inner), off the chain
            dBu_n = Bm[:, n:n + 1] * dtu                        # (LT, d_inner), lane-broadcast
            h_n = jnp.zeros((TB, d_inner), jnp.float32)
            for t in range(S):
                r0 = t * TB
                h_n = dA_n[r0:r0 + TB, :] * h_n + dBu_n[r0:r0 + TB, :]
            y = y + C_last[:, n:n + 1] * h_n
        # TODO(synk): for long sequences / large d_state, replace the static
        # Python unroll with a fori_loop-based scan to bound code size.

        # ------------- D skip + SiLU(z) gate (last timestep only) ---------
        Dp = p_small_ref[ROW_D:ROW_D + 1, :]
        y = y + Dp * u_last
        y = y * (z_last * _sigmoid(z_last))

        # ------------- fused out_proj + Q head, unmasked (8,128) store ----
        if TBp > TB:
            y = jnp.concatenate(
                [y, jnp.zeros((TBp - TB, d_inner), jnp.float32)], axis=0)
        w_tail = p_tail_ref[0:d_inner, :]
        b_tail = p_tail_ref[d_inner:d_inner + 1, :]
        o_ref[...] = jnp.dot(y, w_tail, preferred_element_type=jnp.float32) + b_tail

    return kernel


# --------------------------------------------------------------------------
# Forward wrapper (single pallas_call, batch tiled over a "parallel" grid)
# --------------------------------------------------------------------------
@partial(jax.jit, static_argnames=("dims",))
def latent_mamba_dqn_forward(x, params, dims: MambaDims):
    B, S, input_dim = x.shape
    assert input_dim == dims.input_dim
    x = x.astype(jnp.float32)

    d_model, num_actions = dims.d_model, dims.num_actions
    out_pad = params["p_tail"].shape[1]

    # batch tiling: one grid step per TB batch elements; "parallel" lets v7x
    # spread blocks across its two TensorCores when B is large.
    TB = B if B < 8 else 8
    B_pad = _round_up(B, TB)
    if B_pad != B:
        x = jnp.concatenate(
            [x, jnp.zeros((B_pad - B, S, input_dim), jnp.float32)], axis=0)
    nblk = B_pad // TB
    TBp = max(TB, 8)
    LT = S * TB

    # one contiguous, t-major (LT, input_dim) slab per grid block
    x_blk = (x.reshape(nblk, TB, S, input_dim)
             .transpose(0, 2, 1, 3)
             .reshape(nblk, LT, input_dim))

    weights = [params[k] for k in
               ("p_mlp1", "p_mlp2", "p_in", "p_xproj", "p_small", "p_tail")]

    kernel = _make_kernel(dims, S, TB, TBp)
    out = pl.pallas_call(
        kernel,
        out_shape=jax.ShapeDtypeStruct((nblk * TBp, out_pad), jnp.float32),
        grid=(nblk,),
        in_specs=[pl.BlockSpec((1, LT, input_dim), lambda j: (j, 0, 0))] +
                 [pl.BlockSpec(w.shape, lambda j: (0, 0)) for w in weights],
        out_specs=pl.BlockSpec((TBp, out_pad), lambda j: (j, 0)),
        compiler_params=pltpu.CompilerParams(
            dimension_semantics=("parallel",)),
    )(x_blk, *weights)

    out = out.reshape(nblk, TBp, out_pad)[:, :TB, :].reshape(B_pad, out_pad)[:B]
    latent = out[:, :d_model]
    q_values = out[:, d_model:d_model + num_actions]
    return q_values, latent


# --------------------------------------------------------------------------
# Parameters (deterministic, synthetic).  All folding (low-rank dt proj,
# out_proj+head tail) and packing into lane-dense slabs happens here, once.
# --------------------------------------------------------------------------
def init_params(key, dims: MambaDims):
    input_dim, mlp_hidden, d_model = dims.input_dim, dims.mlp_hidden, dims.d_model
    d_state, d_conv, d_inner = dims.d_state, dims.d_conv, dims.d_inner
    num_actions = dims.num_actions
    dt_rank = math.ceil(d_model / 16)
    ks = list(jax.random.split(key, 16))

    def lin(k, fan_in, shape):
        bound = 1.0 / math.sqrt(fan_in)
        return jax.random.uniform(k, shape, jnp.float32, -bound, bound)

    # raw weights, input-major (in_features, out_features)
    w1 = lin(ks[0], input_dim, (input_dim, mlp_hidden))
    b1 = lin(ks[1], input_dim, (1, mlp_hidden))
    w2 = lin(ks[2], mlp_hidden, (mlp_hidden, d_model))
    b2 = lin(ks[3], mlp_hidden, (1, d_model))
    w_in_x = lin(ks[4], d_model, (d_model, d_inner))
    w_in_z = lin(ks[5], d_model, (d_model, d_inner))
    w_conv_t = lin(ks[6], d_conv, (d_conv, d_inner))     # depthwise taps (k, c)
    b_conv = lin(ks[7], d_conv, (1, d_inner))
    w_dt_in = lin(ks[8], d_inner, (d_inner, dt_rank))
    w_B = lin(ks[9], d_inner, (d_inner, d_state))
    w_C = lin(ks[10], d_inner, (d_inner, d_state))
    w_dt = lin(ks[11], dt_rank, (dt_rank, d_inner))
    b_dt = jnp.full((1, d_inner), math.log(math.expm1(0.01)), jnp.float32)
    a_logT = jnp.log(jnp.broadcast_to(
        jnp.arange(1, d_state + 1, dtype=jnp.float32)[:, None], (d_state, d_inner)))
    D = jnp.ones((1, d_inner), jnp.float32)
    w_out = lin(ks[12], d_inner, (d_inner, d_model))
    w_head = lin(ks[13], d_model, (d_model, num_actions))
    b_head = lin(ks[14], d_model, (1, num_actions))

    # fold low-rank dt projection: (u @ w_dt_in) @ w_dt == u @ (w_dt_in @ w_dt)
    w_dt_fused = w_dt_in @ w_dt

    # fused x_proj: [dt | B | C], lane-padded to a multiple of 128
    xp_w = d_inner + 2 * d_state
    xp_pad = _round_up(xp_w, 128)
    p_xproj = jnp.pad(jnp.concatenate([w_dt_fused, w_B, w_C], axis=1),
                      ((0, 0), (0, xp_pad - xp_w)))

    # fused in_proj: [x | z]
    p_in = jnp.concatenate([w_in_x, w_in_z], axis=1)

    # fused out_proj + Q head: [latent | q] = y @ [w_out | w_out @ w_head]
    out_dim = d_model + num_actions
    out_pad = _round_up(out_dim, 128)
    w_tail = jnp.pad(jnp.concatenate([w_out, w_out @ w_head], axis=1),
                     ((0, 0), (0, out_pad - out_dim)))
    b_tail = jnp.pad(jnp.concatenate(
        [jnp.zeros((1, d_model), jnp.float32), b_head], axis=1),
        ((0, 0), (0, out_pad - out_dim)))

    # packed slabs (6 DMAs instead of 17 tiny ones)
    p_mlp1 = jnp.concatenate([w1, b1], axis=0)                     # (input_dim+1, mlp_hidden)
    p_mlp2 = jnp.concatenate([w2, b2], axis=0)                     # (mlp_hidden+1, d_model)
    p_small = jnp.concatenate([a_logT, w_conv_t, b_conv, b_dt, D], axis=0)
    p_tail = jnp.concatenate([w_tail, b_tail], axis=0)             # (d_inner+1, out_pad)

    return {"p_mlp1": p_mlp1, "p_mlp2": p_mlp2, "p_in": p_in,
            "p_xproj": p_xproj, "p_small": p_small, "p_tail": p_tail}


if __name__ == "__main__":
    # small shapes consistent with the module's constructor arguments
    B, S = 2, 8
    dims = MambaDims(input_dim=16, mlp_hidden=64, d_model=32, d_state=16,
                     d_conv=4, d_inner=64, num_actions=4)   # expand=2 -> d_inner=2*d_model

    key = jax.random.PRNGKey(0)
    pkey, xkey = jax.random.split(key)
    params = init_params(pkey, dims)
    x = jax.random.normal(xkey, (B, S, dims.input_dim), jnp.float32)

    q_values, latent = latent_mamba_dqn_forward(x, params, dims=dims)
    jax.block_until_ready((q_values, latent))

    assert q_values.shape == (B, dims.num_actions) and q_values.dtype == jnp.float32
    assert latent.shape == (B, dims.d_model) and latent.dtype == jnp.float32
    assert bool(jnp.all(jnp.isfinite(q_values))) and bool(jnp.all(jnp.isfinite(latent)))
    print("KERNEL_OK")
</pallas_src>

<mosaic_0001>
module attributes {stable_mosaic.version = 11 : i64} {
  func.func @kernel(%arg0: i32, %arg1: memref<1x16x16xf32, #tpu.memory_space<vmem>>, %arg2: memref<17x64xf32, #tpu.memory_space<vmem>>, %arg3: memref<65x32xf32, #tpu.memory_space<vmem>>, %arg4: memref<32x128xf32, #tpu.memory_space<vmem>>, %arg5: memref<64x128xf32, #tpu.memory_space<vmem>>, %arg6: memref<23x64xf32, #tpu.memory_space<vmem>>, %arg7: memref<65x128xf32, #tpu.memory_space<vmem>>, %arg8: memref<8x128xf32, #tpu.memory_space<vmem>>) attributes {dimension_semantics = [#tpu.dimension_semantics<parallel>], iteration_bounds = array<i64: 1>, scalar_prefetch = 0 : i64, scratch_operands = 0 : i64, tpu.core_type = #tpu.core_type<tc>, window_params = [{transform_indices = @transform_0, window_bounds = array<i64: 1, 16, 16>}, {pipeline_mode = #tpu.pipeline_mode<synchronous>, transform_indices = @transform_1, window_bounds = array<i64: 17, 64>}, {pipeline_mode = #tpu.pipeline_mode<synchronous>, transform_indices = @transform_2, window_bounds = array<i64: 65, 32>}, {pipeline_mode = #tpu.pipeline_mode<synchronous>, transform_indices = @transform_3, window_bounds = array<i64: 32, 128>}, {pipeline_mode = #tpu.pipeline_mode<synchronous>, transform_indices = @transform_4, window_bounds = array<i64: 64, 128>}, {pipeline_mode = #tpu.pipeline_mode<synchronous>, transform_indices = @transform_5, window_bounds = array<i64: 23, 64>}, {pipeline_mode = #tpu.pipeline_mode<synchronous>, transform_indices = @transform_6, window_bounds = array<i64: 65, 128>}, {transform_indices = @transform_7, window_bounds = array<i64: 8, 128>}]} {
    %c0 = arith.constant 0 : index
    %c0_0 = arith.constant 0 : index
    %c0_1 = arith.constant 0 : index
    %0 = vector.load %arg1[%c0, %c0_0, %c0_1] : memref<1x16x16xf32, #tpu.memory_space<vmem>>, vector<1x16x16xf32>
    %1 = vector.shape_cast %0 : vector<1x16x16xf32> to vector<16x16xf32>
    %c0_2 = arith.constant 0 : index
    %c0_3 = arith.constant 0 : index
    %2 = vector.load %arg2[%c0_2, %c0_3] : memref<17x64xf32, #tpu.memory_space<vmem>>, vector<16x64xf32>
    %c16 = arith.constant 16 : index
    %c0_4 = arith.constant 0 : index
    %3 = vector.load %arg2[%c16, %c0_4] : memref<17x64xf32, #tpu.memory_space<vmem>>, vector<1x64xf32>
    %cst = arith.constant dense<0.000000e+00> : vector<16x64xf32>
    %4 = tpu.matmul %1, %2, %cst {dimension_numbers = #tpu.dot_dimension_numbers<[1], [0], [0], [1], [0, 0, 1, 1], [], []>} : vector<16x16xf32>, vector<16x64xf32>, vector<16x64xf32> -> vector<16x64xf32>
    %5 = vector.broadcast %3 : vector<1x64xf32> to vector<16x64xf32>
    %6 = arith.addf %4, %5 : vector<16x64xf32>
    %cst_5 = arith.constant 0.000000e+00 : f32
    %7 = vector.broadcast %cst_5 : f32 to vector<16x64xf32>
    %8 = arith.maximumf %6, %7 : vector<16x64xf32>
    %c0_6 = arith.constant 0 : index
    %c0_7 = arith.constant 0 : index
    %9 = vector.load %arg3[%c0_6, %c0_7] : memref<65x32xf32, #tpu.memory_space<vmem>>, vector<64x32xf32>
    %c64 = arith.constant 64 : index
    %c0_8 = arith.constant 0 : index
    %10 = vector.load %arg3[%c64, %c0_8] : memref<65x32xf32, #tpu.memory_space<vmem>>, vector<1x32xf32>
    %cst_9 = arith.constant dense<0.000000e+00> : vector<16x32xf32>
    %11 = tpu.matmul %8, %9, %cst_9 {dimension_numbers = #tpu.dot_dimension_numbers<[1], [0], [0], [1], [0, 0, 1, 1], [], []>} : vector<16x64xf32>, vector<64x32xf32>, vector<16x32xf32> -> vector<16x32xf32>
    %12 = vector.broadcast %10 : vector<1x32xf32> to vector<16x32xf32>
    %13 = arith.addf %11, %12 : vector<16x32xf32>
    %cst_10 = arith.constant 0.000000e+00 : f32
    %14 = vector.broadcast %cst_10 : f32 to vector<16x32xf32>
    %15 = arith.maximumf %13, %14 : vector<16x32xf32>
    %c0_11 = arith.constant 0 : index
    %c0_12 = arith.constant 0 : index
    %16 = vector.load %arg4[%c0_11, %c0_12] : memref<32x128xf32, #tpu.memory_space<vmem>>, vector<32x128xf32>
    %cst_13 = arith.constant dense<0.000000e+00> : vector<16x128xf32>
    %17 = tpu.matmul %15, %16, %cst_13 {dimension_numbers = #tpu.dot_dimension_numbers<[1], [0], [0], [1], [0, 0, 1, 1], [], []>} : vector<16x32xf32>, vector<32x128xf32>, vector<16x128xf32> -> vector<16x128xf32>
    %18 = vector.extract_strided_slice %17 {offsets = [0, 0], sizes = [16, 64], strides = [1, 1]} : vector<16x128xf32> to vector<16x64xf32>
    %19 = vector.extract_strided_slice %17 {offsets = [14, 64], sizes = [2, 64], strides = [1, 1]} : vector<16x128xf32> to vector<2x64xf32>
    %cst_14 = arith.constant 0.000000e+00 : f32
    %20 = vector.broadcast %cst_14 : f32 to vector<6x64xf32>
    %21 = tpu.concatenate %20, %18 in 0 : vector<6x64xf32>, vector<16x64xf32> -> vector<22x64xf32>
    %c20 = arith.constant 20 : index
    %c0_15 = arith.constant 0 : index
    %22 = vector.load %arg6[%c20, %c0_15] : memref<23x64xf32, #tpu.memory_space<vmem>>, vector<1x64xf32>
    %c16_16 = arith.constant 16 : index
    %c0_17 = arith.constant 0 : index
    %23 = vector.load %arg6[%c16_16, %c0_17] : memref<23x64xf32, #tpu.memory_space<vmem>>, vector<1x64xf32>
    %24 = vector.extract_strided_slice %21 {offsets = [0, 0], sizes = [16, 64], strides = [1, 1]} : vector<22x64xf32> to vector<16x64xf32>
    %25 = vector.broadcast %23 : vector<1x64xf32> to vector<16x64xf32>
    %26 = arith.mulf %24, %25 : vector<16x64xf32>
    %27 = vector.broadcast %22 : vector<1x64xf32> to vector<16x64xf32>
    %28 = arith.addf %27, %26 : vector<16x64xf32>
    %c17 = arith.constant 17 : index
    %c0_18 = arith.constant 0 : index
    %29 = vector.load %arg6[%c17, %c0_18] : memref<23x64xf32, #tpu.memory_space<vmem>>, vector<1x64xf32>
    %30 = vector.extract_strided_slice %21 {offsets = [2, 0], sizes = [16, 64], strides = [1, 1]} : vector<22x64xf32> to vector<16x64xf32>
    %31 = vector.broadcast %29 : vector<1x64xf32> to vector<16x64xf32>
    %32 = arith.mulf %30, %31 : vector<16x64xf32>
    %33 = arith.addf %28, %32 : vector<16x64xf32>
    %c18 = arith.constant 18 : index
    %c0_19 = arith.constant 0 : index
    %34 = vector.load %arg6[%c18, %c0_19] : memref<23x64xf32, #tpu.memory_space<vmem>>, vector<1x64xf32>
    %35 = vector.extract_strided_slice %21 {offsets = [4, 0], sizes = [16, 64], strides = [1, 1]} : vector<22x64xf32> to vector<16x64xf32>
    %36 = vector.broadcast %34 : vector<1x64xf32> to vector<16x64xf32>
    %37 = arith.mulf %35, %36 : vector<16x64xf32>
    %38 = arith.addf %33, %37 : vector<16x64xf32>
    %c19 = arith.constant 19 : index
    %c0_20 = arith.constant 0 : index
    %39 = vector.load %arg6[%c19, %c0_20] : memref<23x64xf32, #tpu.memory_space<vmem>>, vector<1x64xf32>
    %40 = vector.extract_strided_slice %21 {offsets = [6, 0], sizes = [16, 64], strides = [1, 1]} : vector<22x64xf32> to vector<16x64xf32>
    %41 = vector.broadcast %39 : vector<1x64xf32> to vector<16x64xf32>
    %42 = arith.mulf %40, %41 : vector<16x64xf32>
    %43 = arith.addf %38, %42 : vector<16x64xf32>
    %cst_21 = arith.constant 0.000000e+00 : f32
    %44 = vector.broadcast %cst_21 : f32 to vector<16x64xf32>
    %45 = arith.subf %44, %43 : vector<16x64xf32>
    %46 = math.exp %45 : vector<16x64xf32>
    %cst_22 = arith.constant 1.000000e+00 : f32
    %47 = vector.broadcast %cst_22 : f32 to vector<16x64xf32>
    %48 = arith.addf %47, %46 : vector<16x64xf32>
    %49 = tpu.reciprocal %48 {approx = true} : vector<16x64xf32> -> vector<16x64xf32>
    %50 = arith.mulf %43, %49 : vector<16x64xf32>
    %51 = vector.extract_strided_slice %50 {offsets = [14, 0], sizes = [2, 64], strides = [1, 1]} : vector<16x64xf32> to vector<2x64xf32>
    %c0_23 = arith.constant 0 : index
    %c0_24 = arith.constant 0 : index
    %52 = vector.load %arg5[%c0_23, %c0_24] : memref<64x128xf32, #tpu.memory_space<vmem>>, vector<64x128xf32>
    %cst_25 = arith.constant dense<0.000000e+00> : vector<16x128xf32>
    %53 = tpu.matmul %50, %52, %cst_25 {dimension_numbers = #tpu.dot_dimension_numbers<[1], [0], [0], [1], [0, 0, 1, 1], [], []>} : vector<16x64xf32>, vector<64x128xf32>, vector<16x128xf32> -> vector<16x128xf32>
    %c21 = arith.constant 21 : index
    %c0_26 = arith.constant 0 : index
    %54 = vector.load %arg6[%c21, %c0_26] : memref<23x64xf32, #tpu.memory_space<vmem>>, vector<1x64xf32>
    %55 = vector.extract_strided_slice %53 {offsets = [0, 0], sizes = [16, 64], strides = [1, 1]} : vector<16x128xf32> to vector<16x64xf32>
    %56 = vector.broadcast %54 : vector<1x64xf32> to vector<16x64xf32>
    %57 = arith.addf %55, %56 : vector<16x64xf32>
    %cst_27 = arith.constant 2.000000e+01 : f32
    %58 = vector.broadcast %cst_27 : f32 to vector<16x64xf32>
    %59 = arith.cmpf ogt, %57, %58 : vector<16x64xf32>
    %cst_28 = arith.constant 2.000000e+01 : f32
    %60 = vector.broadcast %cst_28 : f32 to vector<16x64xf32>
    %61 = arith.minimumf %57, %60 : vector<16x64xf32>
    %62 = math.exp %61 : vector<16x64xf32>
    %cst_29 = arith.constant 1.000000e+00 : f32
    %63 = vector.broadcast %cst_29 : f32 to vector<16x64xf32>
    %64 = arith.addf %63, %62 : vector<16x64xf32>
    %65 = math.log %64 : vector<16x64xf32>
    %66 = arith.select %59, %57, %65 : vector<16x64xi1>, vector<16x64xf32>
    %67 = vector.extract_strided_slice %53 {offsets = [0, 64], sizes = [16, 16], strides = [1, 1]} : vector<16x128xf32> to vector<16x16xf32>
    %68 = vector.extract_strided_slice %53 {offsets = [14, 80], sizes = [2, 16], strides = [1, 1]} : vector<16x128xf32> to vector<2x16xf32>
    %c0_30 = arith.constant 0 : index
    %c0_31 = arith.constant 0 : index
    %69 = vector.load %arg6[%c0_30, %c0_31] : memref<23x64xf32, #tpu.memory_space<vmem>>, vector<16x64xf32>
    %70 = math.exp %69 : vector<16x64xf32>
    %cst_32 = arith.constant 0.000000e+00 : f32
    %71 = vector.broadcast %cst_32 : f32 to vector<16x64xf32>
    %72 = arith.subf %71, %70 : vector<16x64xf32>
    %73 = arith.mulf %66, %50 : vector<16x64xf32>
    %cst_33 = arith.constant 0.000000e+00 : f32
    %74 = vector.broadcast %cst_33 : f32 to vector<2x64xf32>
    %75 = vector.extract_strided_slice %72 {offsets = [0, 0], sizes = [1, 64], strides = [1, 1]} : vector<16x64xf32> to vector<1x64xf32>
    %76 = vector.broadcast %75 : vector<1x64xf32> to vector<16x64xf32>
    %77 = arith.mulf %66, %76 : vector<16x64xf32>
    %78 = math.exp %77 : vector<16x64xf32>
    %79 = vector.extract_strided_slice %67 {offsets = [0, 0], sizes = [16, 1], strides = [1, 1]} : vector<16x16xf32> to vector<16x1xf32>
    %80 = vector.broadcast %79 : vector<16x1xf32> to vector<16x64xf32>
    %81 = arith.mulf %80, %73 : vector<16x64xf32>
    %cst_34 = arith.constant 0.000000e+00 : f32
    %82 = vector.broadcast %cst_34 : f32 to vector<2x64xf32>
    %83 = vector.extract_strided_slice %78 {offsets = [0, 0], sizes = [2, 64], strides = [1, 1]} : vector<16x64xf32> to vector<2x64xf32>
    %84 = arith.mulf %83, %82 : vector<2x64xf32>
    %85 = vector.extract_strided_slice %81 {offsets = [0, 0], sizes = [2, 64], strides = [1, 1]} : vector<16x64xf32> to vector<2x64xf32>
    %86 = arith.addf %84, %85 : vector<2x64xf32>
    %87 = vector.extract_strided_slice %78 {offsets = [2, 0], sizes = [2, 64], strides = [1, 1]} : vector<16x64xf32> to vector<2x64xf32>
    %88 = arith.mulf %87, %86 : vector<2x64xf32>
    %89 = vector.extract_strided_slice %81 {offsets = [2, 0], sizes = [2, 64], strides = [1, 1]} : vector<16x64xf32> to vector<2x64xf32>
    %90 = arith.addf %88, %89 : vector<2x64xf32>
    %91 = vector.extract_strided_slice %78 {offsets = [4, 0], sizes = [2, 64], strides = [1, 1]} : vector<16x64xf32> to vector<2x64xf32>
    %92 = arith.mulf %91, %90 : vector<2x64xf32>
    %93 = vector.extract_strided_slice %81 {offsets = [4, 0], sizes = [2, 64], strides = [1, 1]} : vector<16x64xf32> to vector<2x64xf32>
    %94 = arith.addf %92, %93 : vector<2x64xf32>
    %95 = vector.extract_strided_slice %78 {offsets = [6, 0], sizes = [2, 64], strides = [1, 1]} : vector<16x64xf32> to vector<2x64xf32>
    %96 = arith.mulf %95, %94 : vector<2x64xf32>
    %97 = vector.extract_strided_slice %81 {offsets = [6, 0], sizes = [2, 64], strides = [1, 1]} : vector<16x64xf32> to vector<2x64xf32>
    %98 = arith.addf %96, %97 : vector<2x64xf32>
    %99 = vector.extract_strided_slice %78 {offsets = [8, 0], sizes = [2, 64], strides = [1, 1]} : vector<16x64xf32> to vector<2x64xf32>
    %100 = arith.mulf %99, %98 : vector<2x64xf32>
    %101 = vector.extract_strided_slice %81 {offsets = [8, 0], sizes = [2, 64], strides = [1, 1]} : vector<16x64xf32> to vector<2x64xf32>
    %102 = arith.addf %100, %101 : vector<2x64xf32>
    %103 = vector.extract_strided_slice %78 {offsets = [10, 0], sizes = [2, 64], strides = [1, 1]} : vector<16x64xf32> to vector<2x64xf32>
    %104 = arith.mulf %103, %102 : vector<2x64xf32>
    %105 = vector.extract_strided_slice %81 {offsets = [10, 0], sizes = [2, 64], strides = [1, 1]} : vector<16x64xf32> to vector<2x64xf32>
    %106 = arith.addf %104, %105 : vector<2x64xf32>
    %107 = vector.extract_strided_slice %78 {offsets = [12, 0], sizes = [2, 64], strides = [1, 1]} : vector<16x64xf32> to vector<2x64xf32>
    %108 = arith.mulf %107, %106 : vector<2x64xf32>
    %109 = vector.extract_strided_slice %81 {offsets = [12, 0], sizes = [2, 64], strides = [1, 1]} : vector<16x64xf32> to vector<2x64xf32>
    %110 = arith.addf %108, %109 : vector<2x64xf32>
    %111 = vector.extract_strided_slice %78 {offsets = [14, 0], sizes = [2, 64], strides = [1, 1]} : vector<16x64xf32> to vector<2x64xf32>
    %112 = arith.mulf %111, %110 : vector<2x64xf32>
    %113 = vector.extract_strided_slice %81 {offsets = [14, 0], sizes = [2, 64], strides = [1, 1]} : vector<16x64xf32> to vector<2x64xf32>
    %114 = arith.addf %112, %113 : vector<2x64xf32>
    %115 = vector.extract_strided_slice %68 {offsets = [0, 0], sizes = [2, 1], strides = [1, 1]} : vector<2x16xf32> to vector<2x1xf32>
    %116 = vector.broadcast %115 : vector<2x1xf32> to vector<2x64xf32>
    %117 = arith.mulf %116, %114 : vector<2x64xf32>
    %118 = arith.addf %74, %117 : vector<2x64xf32>
    %119 = vector.extract_strided_slice %72 {offsets = [1, 0], sizes = [1, 64], strides = [1, 1]} : vector<16x64xf32> to vector<1x64xf32>
    %120 = vector.broadcast %119 : vector<1x64xf32> to vector<16x64xf32>
    %121 = arith.mulf %66, %120 : vector<16x64xf32>
    %122 = math.exp %121 : vector<16x64xf32>
    %123 = vector.extract_strided_slice %67 {offsets = [0, 1], sizes = [16, 1], strides = [1, 1]} : vector<16x16xf32> to vector<16x1xf32>
    %124 = vector.broadcast %123 : vector<16x1xf32> to vector<16x64xf32>
    %125 = arith.mulf %124, %73 : vector<16x64xf32>
    %cst_35 = arith.constant 0.000000e+00 : f32
    %126 = vector.broadcast %cst_35 : f32 to vector<2x64xf32>
    %127 = vector.extract_strided_slice %122 {offsets = [0, 0], sizes = [2, 64], strides = [1, 1]} : vector<16x64xf32> to vector<2x64xf32>
    %128 = arith.mulf %127, %126 : vector<2x64xf32>
    %129 = vector.extract_strided_slice %125 {offsets = [0, 0], sizes = [2, 64], strides = [1, 1]} : vector<16x64xf32> to vector<2x64xf32>
    %130 = arith.addf %128, %129 : vector<2x64xf32>
    %131 = vector.extract_strided_slice %122 {offsets = [2, 0], sizes = [2, 64], strides = [1, 1]} : vector<16x64xf32> to vector<2x64xf32>
    %132 = arith.mulf %131, %130 : vector<2x64xf32>
    %133 = vector.extract_strided_slice %125 {offsets = [2, 0], sizes = [2, 64], strides = [1, 1]} : vector<16x64xf32> to vector<2x64xf32>
    %134 = arith.addf %132, %133 : vector<2x64xf32>
    %135 = vector.extract_strided_slice %122 {offsets = [4, 0], sizes = [2, 64], strides = [1, 1]} : vector<16x64xf32> to vector<2x64xf32>
    %136 = arith.mulf %135, %134 : vector<2x64xf32>
    %137 = vector.extract_strided_slice %125 {offsets = [4, 0], sizes = [2, 64], strides = [1, 1]} : vector<16x64xf32> to vector<2x64xf32>
    %138 = arith.addf %136, %137 : vector<2x64xf32>
    %139 = vector.extract_strided_slice %122 {offsets = [6, 0], sizes = [2, 64], strides = [1, 1]} : vector<16x64xf32> to vector<2x64xf32>
    %140 = arith.mulf %139, %138 : vector<2x64xf32>
    %141 = vector.extract_strided_slice %125 {offsets = [6, 0], sizes = [2, 64], strides = [1, 1]} : vector<16x64xf32> to vector<2x64xf32>
    %142 = arith.addf %140, %141 : vector<2x64xf32>
    %143 = vector.extract_strided_slice %122 {offsets = [8, 0], sizes = [2, 64], strides = [1, 1]} : vector<16x64xf32> to vector<2x64xf32>
    %144 = arith.mulf %143, %142 : vector<2x64xf32>
    %145 = vector.extract_strided_slice %125 {offsets = [8, 0], sizes = [2, 64], strides = [1, 1]} : vector<16x64xf32> to vector<2x64xf32>
    %146 = arith.addf %144, %145 : vector<2x64xf32>
    %147 = vector.extract_strided_slice %122 {offsets = [10, 0], sizes = [2, 64], strides = [1, 1]} : vector<16x64xf32> to vector<2x64xf32>
    %148 = arith.mulf %147, %146 : vector<2x64xf32>
    %149 = vector.extract_strided_slice %125 {offsets = [10, 0], sizes = [2, 64], strides = [1, 1]} : vector<16x64xf32> to vector<2x64xf32>
    %150 = arith.addf %148, %149 : vector<2x64xf32>
    %151 = vector.extract_strided_slice %122 {offsets = [12, 0], sizes = [2, 64], strides = [1, 1]} : vector<16x64xf32> to vector<2x64xf32>
    %152 = arith.mulf %151, %150 : vector<2x64xf32>
    %153 = vector.extract_strided_slice %125 {offsets = [12, 0], sizes = [2, 64], strides = [1, 1]} : vector<16x64xf32> to vector<2x64xf32>
    %154 = arith.addf %152, %153 : vector<2x64xf32>
    %155 = vector.extract_strided_slice %122 {offsets = [14, 0], sizes = [2, 64], strides = [1, 1]} : vector<16x64xf32> to vector<2x64xf32>
    %156 = arith.mulf %155, %154 : vector<2x64xf32>
    %157 = vector.extract_strided_slice %125 {offsets = [14, 0], sizes = [2, 64], strides = [1, 1]} : vector<16x64xf32> to vector<2x64xf32>
    %158 = arith.addf %156, %157 : vector<2x64xf32>
    %159 = vector.extract_strided_slice %68 {offsets = [0, 1], sizes = [2, 1], strides = [1, 1]} : vector<2x16xf32> to vector<2x1xf32>
    %160 = vector.broadcast %159 : vector<2x1xf32> to vector<2x64xf32>
    %161 = arith.mulf %160, %158 : vector<2x64xf32>
    %162 = arith.addf %118, %161 : vector<2x64xf32>
    %163 = vector.extract_strided_slice %72 {offsets = [2, 0], sizes = [1, 64], strides = [1, 1]} : vector<16x64xf32> to vector<1x64xf32>
    %164 = vector.broadcast %163 : vector<1x64xf32> to vector<16x64xf32>
    %165 = arith.mulf %66, %164 : vector<16x64xf32>
    %166 = math.exp %165 : vector<16x64xf32>
    %167 = vector.extract_strided_slice %67 {offsets = [0, 2], sizes = [16, 1], strides = [1, 1]} : vector<16x16xf32> to vector<16x1xf32>
    %168 = vector.broadcast %167 : vector<16x1xf32> to vector<16x64xf32>
    %169 = arith.mulf %168, %73 : vector<16x64xf32>
    %cst_36 = arith.constant 0.000000e+00 : f32
    %170 = vector.broadcast %cst_36 : f32 to vector<2x64xf32>
    %171 = vector.extract_strided_slice %166 {offsets = [0, 0], sizes = [2, 64], strides = [1, 1]} : vector<16x64xf32> to vector<2x64xf32>
    %172 = arith.mulf %171, %170 : vector<2x64xf32>
    %173 = vector.extract_strided_slice %169 {offsets = [0, 0], sizes = [2, 64], strides = [1, 1]} : vector<16x64xf32> to vector<2x64xf32>
    %174 = arith.addf %172, %173 : vector<2x64xf32>
    %175 = vector.extract_strided_slice %166 {offsets = [2, 0], sizes = [2, 64], strides = [1, 1]} : vector<16x64xf32> to vector<2x64xf32>
    %176 = arith.mulf %175, %174 : vector<2x64xf32>
    %177 = vector.extract_strided_slice %169 {offsets = [2, 0], sizes = [2, 64], strides = [1, 1]} : vector<16x64xf32> to vector<2x64xf32>
    %178 = arith.addf %176, %177 : vector<2x64xf32>
    %179 = vector.extract_strided_slice %166 {offsets = [4, 0], sizes = [2, 64], strides = [1, 1]} : vector<16x64xf32> to vector<2x64xf32>
    %180 = arith.mulf %179, %178 : vector<2x64xf32>
    %181 = vector.extract_strided_slice %169 {offsets = [4, 0], sizes = [2, 64], strides = [1, 1]} : vector<16x64xf32> to vector<2x64xf32>
    %182 = arith.addf %180, %181 : vector<2x64xf32>
    %183 = vector.extract_strided_slice %166 {offsets = [6, 0], sizes = [2, 64], strides = [1, 1]} : vector<16x64xf32> to vector<2x64xf32>
    %184 = arith.mulf %183, %182 : vector<2x64xf32>
    %185 = vector.extract_strided_slice %169 {offsets = [6, 0], sizes = [2, 64], strides = [1, 1]} : vector<16x64xf32> to vector<2x64xf32>
    %186 = arith.addf %184, %185 : vector<2x64xf32>
    %187 = vector.extract_strided_slice %166 {offsets = [8, 0], sizes = [2, 64], strides = [1, 1]} : vector<16x64xf32> to vector<2x64xf32>
    %188 = arith.mulf %187, %186 : vector<2x64xf32>
    %189 = vector.extract_strided_slice %169 {offsets = [8, 0], sizes = [2, 64], strides = [1, 1]} : vector<16x64xf32> to vector<2x64xf32>
    %190 = arith.addf %188, %189 : vector<2x64xf32>
    %191 = vector.extract_strided_slice %166 {offsets = [10, 0], sizes = [2, 64], strides = [1, 1]} : vector<16x64xf32> to vector<2x64xf32>
    %192 = arith.mulf %191, %190 : vector<2x64xf32>
    %193 = vector.extract_strided_slice %169 {offsets = [10, 0], sizes = [2, 64], strides = [1, 1]} : vector<16x64xf32> to vector<2x64xf32>
    %194 = arith.addf %192, %193 : vector<2x64xf32>
    %195 = vector.extract_strided_slice %166 {offsets = [12, 0], sizes = [2, 64], strides = [1, 1]} : vector<16x64xf32> to vector<2x64xf32>
    %196 = arith.mulf %195, %194 : vector<2x64xf32>
    %197 = vector.extract_strided_slice %169 {offsets = [12, 0], sizes = [2, 64], strides = [1, 1]} : vector<16x64xf32> to vector<2x64xf32>
    %198 = arith.addf %196, %197 : vector<2x64xf32>
    %199 = vector.extract_strided_slice %166 {offsets = [14, 0], sizes = [2, 64], strides = [1, 1]} : vector<16x64xf32> to vector<2x64xf32>
    %200 = arith.mulf %199, %198 : vector<2x64xf32>
    %201 = vector.extract_strided_slice %169 {offsets = [14, 0], sizes = [2, 64], strides = [1, 1]} : vector<16x64xf32> to vector<2x64xf32>
    %202 = arith.addf %200, %201 : vector<2x64xf32>
    %203 = vector.extract_strided_slice %68 {offsets = [0, 2], sizes = [2, 1], strides = [1, 1]} : vector<2x16xf32> to vector<2x1xf32>
    %204 = vector.broadcast %203 : vector<2x1xf32> to vector<2x64xf32>
    %205 = arith.mulf %204, %202 : vector<2x64xf32>
    %206 = arith.addf %162, %205 : vector<2x64xf32>
    %207 = vector.extract_strided_slice %72 {offsets = [3, 0], sizes = [1, 64], strides = [1, 1]} : vector<16x64xf32> to vector<1x64xf32>
    %208 = vector.broadcast %207 : vector<1x64xf32> to vector<16x64xf32>
    %209 = arith.mulf %66, %208 : vector<16x64xf32>
    %210 = math.exp %209 : vector<16x64xf32>
    %211 = vector.extract_strided_slice %67 {offsets = [0, 3], sizes = [16, 1], strides = [1, 1]} : vector<16x16xf32> to vector<16x1xf32>
    %212 = vector.broadcast %211 : vector<16x1xf32> to vector<16x64xf32>
    %213 = arith.mulf %212, %73 : vector<16x64xf32>
    %cst_37 = arith.constant 0.000000e+00 : f32
    %214 = vector.broadcast %cst_37 : f32 to vector<2x64xf32>
    %215 = vector.extract_strided_slice %210 {offsets = [0, 0], sizes = [2, 64], strides = [1, 1]} : vector<16x64xf32> to vector<2x64xf32>
    %216 = arith.mulf %215, %214 : vector<2x64xf32>
    %217 = vector.extract_strided_slice %213 {offsets = [0, 0], sizes = [2, 64], strides = [1, 1]} : vector<16x64xf32> to vector<2x64xf32>
    %218 = arith.addf %216, %217 : vector<2x64xf32>
    %219 = vector.extract_strided_slice %210 {offsets = [2, 0], sizes = [2, 64], strides = [1, 1]} : vector<16x64xf32> to vector<2x64xf32>
    %220 = arith.mulf %219, %218 : vector<2x64xf32>
    %221 = vector.extract_strided_slice %213 {offsets = [2, 0], sizes = [2, 64], strides = [1, 1]} : vector<16x64xf32> to vector<2x64xf32>
    %222 = arith.addf %220, %221 : vector<2x64xf32>
    %223 = vector.extract_strided_slice %210 {offsets = [4, 0], sizes = [2, 64], strides = [1, 1]} : vector<16x64xf32> to vector<2x64xf32>
    %224 = arith.mulf %223, %222 : vector<2x64xf32>
    %225 = vector.extract_strided_slice %213 {offsets = [4, 0], sizes = [2, 64], strides = [1, 1]} : vector<16x64xf32> to vector<2x64xf32>
    %226 = arith.addf %224, %225 : vector<2x64xf32>
    %227 = vector.extract_strided_slice %210 {offsets = [6, 0], sizes = [2, 64], strides = [1, 1]} : vector<16x64xf32> to vector<2x64xf32>
    %228 = arith.mulf %227, %226 : vector<2x64xf32>
    %229 = vector.extract_strided_slice %213 {offsets = [6, 0], sizes = [2, 64], strides = [1, 1]} : vector<16x64xf32> to vector<2x64xf32>
    %230 = arith.addf %228, %229 : vector<2x64xf32>
    %231 = vector.extract_strided_slice %210 {offsets = [8, 0], sizes = [2, 64], strides = [1, 1]} : vector<16x64xf32> to vector<2x64xf32>
    %232 = arith.mulf %231, %230 : vector<2x64xf32>
    %233 = vector.extract_strided_slice %213 {offsets = [8, 0], sizes = [2, 64], strides = [1, 1]} : vector<16x64xf32> to vector<2x64xf32>
    %234 = arith.addf %232, %233 : vector<2x64xf32>
    %235 = vector.extract_strided_slice %210 {offsets = [10, 0], sizes = [2, 64], strides = [1, 1]} : vector<16x64xf32> to vector<2x64xf32>
    %236 = arith.mulf %235, %234 : vector<2x64xf32>
    %237 = vector.extract_strided_slice %213 {offsets = [10, 0], sizes = [2, 64], strides = [1, 1]} : vector<16x64xf32> to vector<2x64xf32>
    %238 = arith.addf %236, %237 : vector<2x64xf32>
    %239 = vector.extract_strided_slice %210 {offsets = [12, 0], sizes = [2, 64], strides = [1, 1]} : vector<16x64xf32> to vector<2x64xf32>
    %240 = arith.mulf %239, %238 : vector<2x64xf32>
    %241 = vector.extract_strided_slice %213 {offsets = [12, 0], sizes = [2, 64], strides = [1, 1]} : vector<16x64xf32> to vector<2x64xf32>
    %242 = arith.addf %240, %241 : vector<2x64xf32>
    %243 = vector.extract_strided_slice %210 {offsets = [14, 0], sizes = [2, 64], strides = [1, 1]} : vector<16x64xf32> to vector<2x64xf32>
    %244 = arith.mulf %243, %242 : vector<2x64xf32>
    %245 = vector.extract_strided_slice %213 {offsets = [14, 0], sizes = [2, 64], strides = [1, 1]} : vector<16x64xf32> to vector<2x64xf32>
    %246 = arith.addf %244, %245 : vector<2x64xf32>
    %247 = vector.extract_strided_slice %68 {offsets = [0, 3], sizes = [2, 1], strides = [1, 1]} : vector<2x16xf32> to vector<2x1xf32>
    %248 = vector.broadcast %247 : vector<2x1xf32> to vector<2x64xf32>
    %249 = arith.mulf %248, %246 : vector<2x64xf32>
    %250 = arith.addf %206, %249 : vector<2x64xf32>
    %251 = vector.extract_strided_slice %72 {offsets = [4, 0], sizes = [1, 64], strides = [1, 1]} : vector<16x64xf32> to vector<1x64xf32>
    %252 = vector.broadcast %251 : vector<1x64xf32> to vector<16x64xf32>
    %253 = arith.mulf %66, %252 : vector<16x64xf32>
    %254 = math.exp %253 : vector<16x64xf32>
    %255 = vector.extract_strided_slice %67 {offsets = [0, 4], sizes = [16, 1], strides = [1, 1]} : vector<16x16xf32> to vector<16x1xf32>
    %256 = vector.broadcast %255 : vector<16x1xf32> to vector<16x64xf32>
    %257 = arith.mulf %256, %73 : vector<16x64xf32>
    %cst_38 = arith.constant 0.000000e+00 : f32
    %258 = vector.broadcast %cst_38 : f32 to vector<2x64xf32>
    %259 = vector.extract_strided_slice %254 {offsets = [0, 0], sizes = [2, 64], strides = [1, 1]} : vector<16x64xf32> to vector<2x64xf32>
    %260 = arith.mulf %259, %258 : vector<2x64xf32>
    %261 = vector.extract_strided_slice %257 {offsets = [0, 0], sizes = [2, 64], strides = [1, 1]} : vector<16x64xf32> to vector<2x64xf32>
    %262 = arith.addf %260, %261 : vector<2x64xf32>
    %263 = vector.extract_strided_slice %254 {offsets = [2, 0], sizes = [2, 64], strides = [1, 1]} : vector<16x64xf32> to vector<2x64xf32>
    %264 = arith.mulf %263, %262 : vector<2x64xf32>
    %265 = vector.extract_strided_slice %257 {offsets = [2, 0], sizes = [2, 64], strides = [1, 1]} : vector<16x64xf32> to vector<2x64xf32>
    %266 = arith.addf %264, %265 : vector<2x64xf32>
    %267 = vector.extract_strided_slice %254 {offsets = [4, 0], sizes = [2, 64], strides = [1, 1]} : vector<16x64xf32> to vector<2x64xf32>
    %268 = arith.mulf %267, %266 : vector<2x64xf32>
    %269 = vector.extract_strided_slice %257 {offsets = [4, 0], sizes = [2, 64], strides = [1, 1]} : vector<16x64xf32> to vector<2x64xf32>
    %270 = arith.addf %268, %269 : vector<2x64xf32>
    %271 = vector.extract_strided_slice %254 {offsets = [6, 0], sizes = [2, 64], strides = [1, 1]} : vector<16x64xf32> to vector<2x64xf32>
    %272 = arith.mulf %271, %270 : vector<2x64xf32>
    %273 = vector.extract_strided_slice %257 {offsets = [6, 0], sizes = [2, 64], strides = [1, 1]} : vector<16x64xf32> to vector<2x64xf32>
    %274 = arith.addf %272, %273 : vector<2x64xf32>
    %275 = vector.extract_strided_slice %254 {offsets = [8, 0], sizes = [2, 64], strides = [1, 1]} : vector<16x64xf32> to vector<2x64xf32>
    %276 = arith.mulf %275, %274 : vector<2x64xf32>
    %277 = vector.extract_strided_slice %257 {offsets = [8, 0], sizes = [2, 64], strides = [1, 1]} : vector<16x64xf32> to vector<2x64xf32>
    %278 = arith.addf %276, %277 : vector<2x64xf32>
    %279 = vector.extract_strided_slice %254 {offsets = [10, 0], sizes = [2, 64], strides = [1, 1]} : vector<16x64xf32> to vector<2x64xf32>
    %280 = arith.mulf %279, %278 : vector<2x64xf32>
    %281 = vector.extract_strided_slice %257 {offsets = [10, 0], sizes = [2, 64], strides = [1, 1]} : vector<16x64xf32> to vector<2x64xf32>
    %282 = arith.addf %280, %281 : vector<2x64xf32>
    %283 = vector.extract_strided_slice %254 {offsets = [12, 0], sizes = [2, 64], strides = [1, 1]} : vector<16x64xf32> to vector<2x64xf32>
    %284 = arith.mulf %283, %282 : vector<2x64xf32>
    %285 = vector.extract_strided_slice %257 {offsets = [12, 0], sizes = [2, 64], strides = [1, 1]} : vector<16x64xf32> to vector<2x64xf32>
    %286 = arith.addf %284, %285 : vector<2x64xf32>
    %287 = vector.extract_strided_slice %254 {offsets = [14, 0], sizes = [2, 64], strides = [1, 1]} : vector<16x64xf32> to vector<2x64xf32>
    %288 = arith.mulf %287, %286 : vector<2x64xf32>
    %289 = vector.extract_strided_slice %257 {offsets = [14, 0], sizes = [2, 64], strides = [1, 1]} : vector<16x64xf32> to vector<2x64xf32>
    %290 = arith.addf %288, %289 : vector<2x64xf32>
    %291 = vector.extract_strided_slice %68 {offsets = [0, 4], sizes = [2, 1], strides = [1, 1]} : vector<2x16xf32> to vector<2x1xf32>
    %292 = vector.broadcast %291 : vector<2x1xf32> to vector<2x64xf32>
    %293 = arith.mulf %292, %290 : vector<2x64xf32>
    %294 = arith.addf %250, %293 : vector<2x64xf32>
    %295 = vector.extract_strided_slice %72 {offsets = [5, 0], sizes = [1, 64], strides = [1, 1]} : vector<16x64xf32> to vector<1x64xf32>
    %296 = vector.broadcast %295 : vector<1x64xf32> to vector<16x64xf32>
    %297 = arith.mulf %66, %296 : vector<16x64xf32>
    %298 = math.exp %297 : vector<16x64xf32>
    %299 = vector.extract_strided_slice %67 {offsets = [0, 5], sizes = [16, 1], strides = [1, 1]} : vector<16x16xf32> to vector<16x1xf32>
    %300 = vector.broadcast %299 : vector<16x1xf32> to vector<16x64xf32>
    %301 = arith.mulf %300, %73 : vector<16x64xf32>
    %cst_39 = arith.constant 0.000000e+00 : f32
    %302 = vector.broadcast %cst_39 : f32 to vector<2x64xf32>
    %303 = vector.extract_strided_slice %298 {offsets = [0, 0], sizes = [2, 64], strides = [1, 1]} : vector<16x64xf32> to vector<2x64xf32>
    %304 = arith.mulf %303, %302 : vector<2x64xf32>
    %305 = vector.extract_strided_slice %301 {offsets = [0, 0], sizes = [2, 64], strides = [1, 1]} : vector<16x64xf32> to vector<2x64xf32>
    %306 = arith.addf %304, %305 : vector<2x64xf32>
    %307 = vector.extract_strided_slice %298 {offsets = [2, 0], sizes = [2, 64], strides = [1, 1]} : vector<16x64xf32> to vector<2x64xf32>
    %308 = arith.mulf %307, %306 : vector<2x64xf32>
    %309 = vector.extract_strided_slice %301 {offsets = [2, 0], sizes = [2, 64], strides = [1, 1]} : vector<16x64xf32> to vector<2x64xf32>
    %310 = arith.addf %308, %309 : vector<2x64xf32>
    %311 = vector.extract_strided_slice %298 {offsets = [4, 0], sizes = [2, 64], strides = [1, 1]} : vector<16x64xf32> to vector<2x64xf32>
    %312 = arith.mulf %311, %310 : vector<2x64xf32>
    %313 = vector.extract_strided_slice %301 {offsets = [4, 0], sizes = [2, 64], strides = [1, 1]} : vector<16x64xf32> to vector<2x64xf32>
    %314 = arith.addf %312, %313 : vector<2x64xf32>
    %315 = vector.extract_strided_slice %298 {offsets = [6, 0], sizes = [2, 64], strides = [1, 1]} : vector<16x64xf32> to vector<2x64xf32>
    %316 = arith.mulf %315, %314 : vector<2x64xf32>
    %317 = vector.extract_strided_slice %301 {offsets = [6, 0], sizes = [2, 64], strides = [1, 1]} : vector<16x64xf32> to vector<2x64xf32>
    %318 = arith.addf %316, %317 : vector<2x64xf32>
    %319 = vector.extract_strided_slice %298 {offsets = [8, 0], sizes = [2, 64], strides = [1, 1]} : vector<16x64xf32> to vector<2x64xf32>
    %320 = arith.mulf %319, %318 : vector<2x64xf32>
    %321 = vector.extract_strided_slice %301 {offsets = [8, 0], sizes = [2, 64], strides = [1, 1]} : vector<16x64xf32> to vector<2x64xf32>
    %322 = arith.addf %320, %321 : vector<2x64xf32>
    %323 = vector.extract_strided_slice %298 {offsets = [10, 0], sizes = [2, 64], strides = [1, 1]} : vector<16x64xf32> to vector<2x64xf32>
    %324 = arith.mulf %323, %322 : vector<2x64xf32>
    %325 = vector.extract_strided_slice %301 {offsets = [10, 0], sizes = [2, 64], strides = [1, 1]} : vector<16x64xf32> to vector<2x64xf32>
    %326 = arith.addf %324, %325 : vector<2x64xf32>
    %327 = vector.extract_strided_slice %298 {offsets = [12, 0], sizes = [2, 64], strides = [1, 1]} : vector<16x64xf32> to vector<2x64xf32>
    %328 = arith.mulf %327, %326 : vector<2x64xf32>
    %329 = vector.extract_strided_slice %301 {offsets = [12, 0], sizes = [2, 64], strides = [1, 1]} : vector<16x64xf32> to vector<2x64xf32>
    %330 = arith.addf %328, %329 : vector<2x64xf32>
    %331 = vector.extract_strided_slice %298 {offsets = [14, 0], sizes = [2, 64], strides = [1, 1]} : vector<16x64xf32> to vector<2x64xf32>
    %332 = arith.mulf %331, %330 : vector<2x64xf32>
    %333 = vector.extract_strided_slice %301 {offsets = [14, 0], sizes = [2, 64], strides = [1, 1]} : vector<16x64xf32> to vector<2x64xf32>
    %334 = arith.addf %332, %333 : vector<2x64xf32>
    %335 = vector.extract_strided_slice %68 {offsets = [0, 5], sizes = [2, 1], strides = [1, 1]} : vector<2x16xf32> to vector<2x1xf32>
    %336 = vector.broadcast %335 : vector<2x1xf32> to vector<2x64xf32>
    %337 = arith.mulf %336, %334 : vector<2x64xf32>
    %338 = arith.addf %294, %337 : vector<2x64xf32>
    %339 = vector.extract_strided_slice %72 {offsets = [6, 0], sizes = [1, 64], strides = [1, 1]} : vector<16x64xf32> to vector<1x64xf32>
    %340 = vector.broadcast %339 : vector<1x64xf32> to vector<16x64xf32>
    %341 = arith.mulf %66, %340 : vector<16x64xf32>
    %342 = math.exp %341 : vector<16x64xf32>
    %343 = vector.extract_strided_slice %67 {offsets = [0, 6], sizes = [16, 1], strides = [1, 1]} : vector<16x16xf32> to vector<16x1xf32>
    %344 = vector.broadcast %343 : vector<16x1xf32> to vector<16x64xf32>
    %345 = arith.mulf %344, %73 : vector<16x64xf32>
    %cst_40 = arith.constant 0.000000e+00 : f32
    %346 = vector.broadcast %cst_40 : f32 to vector<2x64xf32>
    %347 = vector.extract_strided_slice %342 {offsets = [0, 0], sizes = [2, 64], strides = [1, 1]} : vector<16x64xf32> to vector<2x64xf32>
    %348 = arith.mulf %347, %346 : vector<2x64xf32>
    %349 = vector.extract_strided_slice %345 {offsets = [0, 0], sizes = [2, 64], strides = [1, 1]} : vector<16x64xf32> to vector<2x64xf32>
    %350 = arith.addf %348, %349 : vector<2x64xf32>
    %351 = vector.extract_strided_slice %342 {offsets = [2, 0], sizes = [2, 64], strides = [1, 1]} : vector<16x64xf32> to vector<2x64xf32>
    %352 = arith.mulf %351, %350 : vector<2x64xf32>
    %353 = vector.extract_strided_slice %345 {offsets = [2, 0], sizes = [2, 64], strides = [1, 1]} : vector<16x64xf32> to vector<2x64xf32>
    %354 = arith.addf %352, %353 : vector<2x64xf32>
    %355 = vector.extract_strided_slice %342 {offsets = [4, 0], sizes = [2, 64], strides = [1, 1]} : vector<16x64xf32> to vector<2x64xf32>
    %356 = arith.mulf %355, %354 : vector<2x64xf32>
    %357 = vector.extract_strided_slice %345 {offsets = [4, 0], sizes = [2, 64], strides = [1, 1]} : vector<16x64xf32> to vector<2x64xf32>
    %358 = arith.addf %356, %357 : vector<2x64xf32>
    %359 = vector.extract_strided_slice %342 {offsets = [6, 0], sizes = [2, 64], strides = [1, 1]} : vector<16x64xf32> to vector<2x64xf32>
    %360 = arith.mulf %359, %358 : vector<2x64xf32>
    %361 = vector.extract_strided_slice %345 {offsets = [6, 0], sizes = [2, 64], strides = [1, 1]} : vector<16x64xf32> to vector<2x64xf32>
    %362 = arith.addf %360, %361 : vector<2x64xf32>
    %363 = vector.extract_strided_slice %342 {offsets = [8, 0], sizes = [2, 64], strides = [1, 1]} : vector<16x64xf32> to vector<2x64xf32>
    %364 = arith.mulf %363, %362 : vector<2x64xf32>
    %365 = vector.extract_strided_slice %345 {offsets = [8, 0], sizes = [2, 64], strides = [1, 1]} : vector<16x64xf32> to vector<2x64xf32>
    %366 = arith.addf %364, %365 : vector<2x64xf32>
    %367 = vector.extract_strided_slice %342 {offsets = [10, 0], sizes = [2, 64], strides = [1, 1]} : vector<16x64xf32> to vector<2x64xf32>
    %368 = arith.mulf %367, %366 : vector<2x64xf32>
    %369 = vector.extract_strided_slice %345 {offsets = [10, 0], sizes = [2, 64], strides = [1, 1]} : vector<16x64xf32> to vector<2x64xf32>
    %370 = arith.addf %368, %369 : vector<2x64xf32>
    %371 = vector.extract_strided_slice %342 {offsets = [12, 0], sizes = [2, 64], strides = [1, 1]} : vector<16x64xf32> to vector<2x64xf32>
    %372 = arith.mulf %371, %370 : vector<2x64xf32>
    %373 = vector.extract_strided_slice %345 {offsets = [12, 0], sizes = [2, 64], strides = [1, 1]} : vector<16x64xf32> to vector<2x64xf32>
    %374 = arith.addf %372, %373 : vector<2x64xf32>
    %375 = vector.extract_strided_slice %342 {offsets = [14, 0], sizes = [2, 64], strides = [1, 1]} : vector<16x64xf32> to vector<2x64xf32>
    %376 = arith.mulf %375, %374 : vector<2x64xf32>
    %377 = vector.extract_strided_slice %345 {offsets = [14, 0], sizes = [2, 64], strides = [1, 1]} : vector<16x64xf32> to vector<2x64xf32>
    %378 = arith.addf %376, %377 : vector<2x64xf32>
    %379 = vector.extract_strided_slice %68 {offsets = [0, 6], sizes = [2, 1], strides = [1, 1]} : vector<2x16xf32> to vector<2x1xf32>
    %380 = vector.broadcast %379 : vector<2x1xf32> to vector<2x64xf32>
    %381 = arith.mulf %380, %378 : vector<2x64xf32>
    %382 = arith.addf %338, %381 : vector<2x64xf32>
    %383 = vector.extract_strided_slice %72 {offsets = [7, 0], sizes = [1, 64], strides = [1, 1]} : vector<16x64xf32> to vector<1x64xf32>
    %384 = vector.broadcast %383 : vector<1x64xf32> to vector<16x64xf32>
    %385 = arith.mulf %66, %384 : vector<16x64xf32>
    %386 = math.exp %385 : vector<16x64xf32>
    %387 = vector.extract_strided_slice %67 {offsets = [0, 7], sizes = [16, 1], strides = [1, 1]} : vector<16x16xf32> to vector<16x1xf32>
    %388 = vector.broadcast %387 : vector<16x1xf32> to vector<16x64xf32>
    %389 = arith.mulf %388, %73 : vector<16x64xf32>
    %cst_41 = arith.constant 0.000000e+00 : f32
    %390 = vector.broadcast %cst_41 : f32 to vector<2x64xf32>
    %391 = vector.extract_strided_slice %386 {offsets = [0, 0], sizes = [2, 64], strides = [1, 1]} : vector<16x64xf32> to vector<2x64xf32>
    %392 = arith.mulf %391, %390 : vector<2x64xf32>
    %393 = vector.extract_strided_slice %389 {offsets = [0, 0], sizes = [2, 64], strides = [1, 1]} : vector<16x64xf32> to vector<2x64xf32>
    %394 = arith.addf %392, %393 : vector<2x64xf32>
    %395 = vector.extract_strided_slice %386 {offsets = [2, 0], sizes = [2, 64], strides = [1, 1]} : vector<16x64xf32> to vector<2x64xf32>
    %396 = arith.mulf %395, %394 : vector<2x64xf32>
    %397 = vector.extract_strided_slice %389 {offsets = [2, 0], sizes = [2, 64], strides = [1, 1]} : vector<16x64xf32> to vector<2x64xf32>
    %398 = arith.addf %396, %397 : vector<2x64xf32>
    %399 = vector.extract_strided_slice %386 {offsets = [4, 0], sizes = [2, 64], strides = [1, 1]} : vector<16x64xf32> to vector<2x64xf32>
    %400 = arith.mulf %399, %398 : vector<2x64xf32>
    %401 = vector.extract_strided_slice %389 {offsets = [4, 0], sizes = [2, 64], strides = [1, 1]} : vector<16x64xf32> to vector<2x64xf32>
    %402 = arith.addf %400, %401 : vector<2x64xf32>
    %403 = vector.extract_strided_slice %386 {offsets = [6, 0], sizes = [2, 64], strides = [1, 1]} : vector<16x64xf32> to vector<2x64xf32>
    %404 = arith.mulf %403, %402 : vector<2x64xf32>
    %405 = vector.extract_strided_slice %389 {offsets = [6, 0], sizes = [2, 64], strides = [1, 1]} : vector<16x64xf32> to vector<2x64xf32>
    %406 = arith.addf %404, %405 : vector<2x64xf32>
    %407 = vector.extract_strided_slice %386 {offsets = [8, 0], sizes = [2, 64], strides = [1, 1]} : vector<16x64xf32> to vector<2x64xf32>
    %408 = arith.mulf %407, %406 : vector<2x64xf32>
    %409 = vector.extract_strided_slice %389 {offsets = [8, 0], sizes = [2, 64], strides = [1, 1]} : vector<16x64xf32> to vector<2x64xf32>
    %410 = arith.addf %408, %409 : vector<2x64xf32>
    %411 = vector.extract_strided_slice %386 {offsets = [10, 0], sizes = [2, 64], strides = [1, 1]} : vector<16x64xf32> to vector<2x64xf32>
    %412 = arith.mulf %411, %410 : vector<2x64xf32>
    %413 = vector.extract_strided_slice %389 {offsets = [10, 0], sizes = [2, 64], strides = [1, 1]} : vector<16x64xf32> to vector<2x64xf32>
    %414 = arith.addf %412, %413 : vector<2x64xf32>
    %415 = vector.extract_strided_slice %386 {offsets = [12, 0], sizes = [2, 64], strides = [1, 1]} : vector<16x64xf32> to vector<2x64xf32>
    %416 = arith.mulf %415, %414 : vector<2x64xf32>
    %417 = vector.extract_strided_slice %389 {offsets = [12, 0], sizes = [2, 64], strides = [1, 1]} : vector<16x64xf32> to vector<2x64xf32>
    %418 = arith.addf %416, %417 : vector<2x64xf32>
    %419 = vector.extract_strided_slice %386 {offsets = [14, 0], sizes = [2, 64], strides = [1, 1]} : vector<16x64xf32> to vector<2x64xf32>
    %420 = arith.mulf %419, %418 : vector<2x64xf32>
    %421 = vector.extract_strided_slice %389 {offsets = [14, 0], sizes = [2, 64], strides = [1, 1]} : vector<16x64xf32> to vector<2x64xf32>
    %422 = arith.addf %420, %421 : vector<2x64xf32>
    %423 = vector.extract_strided_slice %68 {offsets = [0, 7], sizes = [2, 1], strides = [1, 1]} : vector<2x16xf32> to vector<2x1xf32>
    %424 = vector.broadcast %423 : vector<2x1xf32> to vector<2x64xf32>
    %425 = arith.mulf %424, %422 : vector<2x64xf32>
    %426 = arith.addf %382, %425 : vector<2x64xf32>
    %427 = vector.extract_strided_slice %72 {offsets = [8, 0], sizes = [1, 64], strides = [1, 1]} : vector<16x64xf32> to vector<1x64xf32>
    %428 = vector.broadcast %427 : vector<1x64xf32> to vector<16x64xf32>
    %429 = arith.mulf %66, %428 : vector<16x64xf32>
    %430 = math.exp %429 : vector<16x64xf32>
    %431 = vector.extract_strided_slice %67 {offsets = [0, 8], sizes = [16, 1], strides = [1, 1]} : vector<16x16xf32> to vector<16x1xf32>
    %432 = vector.broadcast %431 : vector<16x1xf32> to vector<16x64xf32>
    %433 = arith.mulf %432, %73 : vector<16x64xf32>
    %cst_42 = arith.constant 0.000000e+00 : f32
    %434 = vector.broadcast %cst_42 : f32 to vector<2x64xf32>
    %435 = vector.extract_strided_slice %430 {offsets = [0, 0], sizes = [2, 64], strides = [1, 1]} : vector<16x64xf32> to vector<2x64xf32>
    %436 = arith.mulf %435, %434 : vector<2x64xf32>
    %437 = vector.extract_strided_slice %433 {offsets = [0, 0], sizes = [2, 64], strides = [1, 1]} : vector<16x64xf32> to vector<2x64xf32>
    %438 = arith.addf %436, %437 : vector<2x64xf32>
    %439 = vector.extract_strided_slice %430 {offsets = [2, 0], sizes = [2, 64], strides = [1, 1]} : vector<16x64xf32> to vector<2x64xf32>
    %440 = arith.mulf %439, %438 : vector<2x64xf32>
    %441 = vector.extract_strided_slice %433 {offsets = [2, 0], sizes = [2, 64], strides = [1, 1]} : vector<16x64xf32> to vector<2x64xf32>
    %442 = arith.addf %440, %441 : vector<2x64xf32>
    %443 = vector.extract_strided_slice %430 {offsets = [4, 0], sizes = [2, 64], strides = [1, 1]} : vector<16x64xf32> to vector<2x64xf32>
    %444 = arith.mulf %443, %442 : vector<2x64xf32>
    %445 = vector.extract_strided_slice %433 {offsets = [4, 0], sizes = [2, 64], strides = [1, 1]} : vector<16x64xf32> to vector<2x64xf32>
    %446 = arith.addf %444, %445 : vector<2x64xf32>
    %447 = vector.extract_strided_slice %430 {offsets = [6, 0], sizes = [2, 64], strides = [1, 1]} : vector<16x64xf32> to vector<2x64xf32>
    %448 = arith.mulf %447, %446 : vector<2x64xf32>
    %449 = vector.extract_strided_slice %433 {offsets = [6, 0], sizes = [2, 64], strides = [1, 1]} : vector<16x64xf32> to vector<2x64xf32>
    %450 = arith.addf %448, %449 : vector<2x64xf32>
    %451 = vector.extract_strided_slice %430 {offsets = [8, 0], sizes = [2, 64], strides = [1, 1]} : vector<16x64xf32> to vector<2x64xf32>
    %452 = arith.mulf %451, %450 : vector<2x64xf32>
    %453 = vector.extract_strided_slice %433 {offsets = [8, 0], sizes = [2, 64], strides = [1, 1]} : vector<16x64xf32> to vector<2x64xf32>
    %454 = arith.addf %452, %453 : vector<2x64xf32>
    %455 = vector.extract_strided_slice %430 {offsets = [10, 0], sizes = [2, 64], strides = [1, 1]} : vector<16x64xf32> to vector<2x64xf32>
    %456 = arith.mulf %455, %454 : vector<2x64xf32>
    %457 = vector.extract_strided_slice %433 {offsets = [10, 0], sizes = [2, 64], strides = [1, 1]} : vector<16x64xf32> to vector<2x64xf32>
    %458 = arith.addf %456, %457 : vector<2x64xf32>
    %459 = vector.extract_strided_slice %430 {offsets = [12, 0], sizes = [2, 64], strides = [1, 1]} : vector<16x64xf32> to vector<2x64xf32>
    %460 = arith.mulf %459, %458 : vector<2x64xf32>
    %461 = vector.extract_strided_slice %433 {offsets = [12, 0], sizes = [2, 64], strides = [1, 1]} : vector<16x64xf32> to vector<2x64xf32>
    %462 = arith.addf %460, %461 : vector<2x64xf32>
    %463 = vector.extract_strided_slice %430 {offsets = [14, 0], sizes = [2, 64], strides = [1, 1]} : vector<16x64xf32> to vector<2x64xf32>
    %464 = arith.mulf %463, %462 : vector<2x64xf32>
    %465 = vector.extract_strided_slice %433 {offsets = [14, 0], sizes = [2, 64], strides = [1, 1]} : vector<16x64xf32> to vector<2x64xf32>
    %466 = arith.addf %464, %465 : vector<2x64xf32>
    %467 = vector.extract_strided_slice %68 {offsets = [0, 8], sizes = [2, 1], strides = [1, 1]} : vector<2x16xf32> to vector<2x1xf32>
    %468 = vector.broadcast %467 : vector<2x1xf32> to vector<2x64xf32>
    %469 = arith.mulf %468, %466 : vector<2x64xf32>
    %470 = arith.addf %426, %469 : vector<2x64xf32>
    %471 = vector.extract_strided_slice %72 {offsets = [9, 0], sizes = [1, 64], strides = [1, 1]} : vector<16x64xf32> to vector<1x64xf32>
    %472 = vector.broadcast %471 : vector<1x64xf32> to vector<16x64xf32>
    %473 = arith.mulf %66, %472 : vector<16x64xf32>
    %474 = math.exp %473 : vector<16x64xf32>
    %475 = vector.extract_strided_slice %67 {offsets = [0, 9], sizes = [16, 1], strides = [1, 1]} : vector<16x16xf32> to vector<16x1xf32>
    %476 = vector.broadcast %475 : vector<16x1xf32> to vector<16x64xf32>
    %477 = arith.mulf %476, %73 : vector<16x64xf32>
    %cst_43 = arith.constant 0.000000e+00 : f32
    %478 = vector.broadcast %cst_43 : f32 to vector<2x64xf32>
    %479 = vector.extract_strided_slice %474 {offsets = [0, 0], sizes = [2, 64], strides = [1, 1]} : vector<16x64xf32> to vector<2x64xf32>
    %480 = arith.mulf %479, %478 : vector<2x64xf32>
    %481 = vector.extract_strided_slice %477 {offsets = [0, 0], sizes = [2, 64], strides = [1, 1]} : vector<16x64xf32> to vector<2x64xf32>
    %482 = arith.addf %480, %481 : vector<2x64xf32>
    %483 = vector.extract_strided_slice %474 {offsets = [2, 0], sizes = [2, 64], strides = [1, 1]} : vector<16x64xf32> to vector<2x64xf32>
    %484 = arith.mulf %483, %482 : vector<2x64xf32>
    %485 = vector.extract_strided_slice %477 {offsets = [2, 0], sizes = [2, 64], strides = [1, 1]} : vector<16x64xf32> to vector<2x64xf32>
    %486 = arith.addf %484, %485 : vector<2x64xf32>
    %487 = vector.extract_strided_slice %474 {offsets = [4, 0], sizes = [2, 64], strides = [1, 1]} : vector<16x64xf32> to vector<2x64xf32>
    %488 = arith.mulf %487, %486 : vector<2x64xf32>
    %489 = vector.extract_strided_slice %477 {offsets = [4, 0], sizes = [2, 64], strides = [1, 1]} : vector<16x64xf32> to vector<2x64xf32>
    %490 = arith.addf %488, %489 : vector<2x64xf32>
    %491 = vector.extract_strided_slice %474 {offsets = [6, 0], sizes = [2, 64], strides = [1, 1]} : vector<16x64xf32> to vector<2x64xf32>
    %492 = arith.mulf %491, %490 : vector<2x64xf32>
    %493 = vector.extract_strided_slice %477 {offsets = [6, 0], sizes = [2, 64], strides = [1, 1]} : vector<16x64xf32> to vector<2x64xf32>
    %494 = arith.addf %492, %493 : vector<2x64xf32>
    %495 = vector.extract_strided_slice %474 {offsets = [8, 0], sizes = [2, 64], strides = [1, 1]} : vector<16x64xf32> to vector<2x64xf32>
    %496 = arith.mulf %495, %494 : vector<2x64xf32>
    %497 = vector.extract_strided_slice %477 {offsets = [8, 0], sizes = [2, 64], strides = [1, 1]} : vector<16x64xf32> to vector<2x64xf32>
    %498 = arith.addf %496, %497 : vector<2x64xf32>
    %499 = vector.extract_strided_slice %474 {offsets = [10, 0], sizes = [2, 64], strides = [1, 1]} : vector<16x64xf32> to vector<2x64xf32>
    %500 = arith.mulf %499, %498 : vector<2x64xf32>
    %501 = vector.extract_strided_slice %477 {offsets = [10, 0], sizes = [2, 64], strides = [1, 1]} : vector<16x64xf32> to vector<2x64xf32>
    %502 = arith.addf %500, %501 : vector<2x64xf32>
    %503 = vector.extract_strided_slice %474 {offsets = [12, 0], sizes = [2, 64], strides = [1, 1]} : vector<16x64xf32> to vector<2x64xf32>
    %504 = arith.mulf %503, %502 : vector<2x64xf32>
    %505 = vector.extract_strided_slice %477 {offsets = [12, 0], sizes = [2, 64], strides = [1, 1]} : vector<16x64xf32> to vector<2x64xf32>
    %506 = arith.addf %504, %505 : vector<2x64xf32>
    %507 = vector.extract_strided_slice %474 {offsets = [14, 0], sizes = [2, 64], strides = [1, 1]} : vector<16x64xf32> to vector<2x64xf32>
    %508 = arith.mulf %507, %506 : vector<2x64xf32>
    %509 = vector.extract_strided_slice %477 {offsets = [14, 0], sizes = [2, 64], strides = [1, 1]} : vector<16x64xf32> to vector<2x64xf32>
    %510 = arith.addf %508, %509 : vector<2x64xf32>
    %511 = vector.extract_strided_slice %68 {offsets = [0, 9], sizes = [2, 1], strides = [1, 1]} : vector<2x16xf32> to vector<2x1xf32>
    %512 = vector.broadcast %511 : vector<2x1xf32> to vector<2x64xf32>
    %513 = arith.mulf %512, %510 : vector<2x64xf32>
    %514 = arith.addf %470, %513 : vector<2x64xf32>
    %515 = vector.extract_strided_slice %72 {offsets = [10, 0], sizes = [1, 64], strides = [1, 1]} : vector<16x64xf32> to vector<1x64xf32>
    %516 = vector.broadcast %515 : vector<1x64xf32> to vector<16x64xf32>
    %517 = arith.mulf %66, %516 : vector<16x64xf32>
    %518 = math.exp %517 : vector<16x64xf32>
    %519 = vector.extract_strided_slice %67 {offsets = [0, 10], sizes = [16, 1], strides = [1, 1]} : vector<16x16xf32> to vector<16x1xf32>
    %520 = vector.broadcast %519 : vector<16x1xf32> to vector<16x64xf32>
    %521 = arith.mulf %520, %73 : vector<16x64xf32>
    %cst_44 = arith.constant 0.000000e+00 : f32
    %522 = vector.broadcast %cst_44 : f32 to vector<2x64xf32>
    %523 = vector.extract_strided_slice %518 {offsets = [0, 0], sizes = [2, 64], strides = [1, 1]} : vector<16x64xf32> to vector<2x64xf32>
    %524 = arith.mulf %523, %522 : vector<2x64xf32>
    %525 = vector.extract_strided_slice %521 {offsets = [0, 0], sizes = [2, 64], strides = [1, 1]} : vector<16x64xf32> to vector<2x64xf32>
    %526 = arith.addf %524, %525 : vector<2x64xf32>
    %527 = vector.extract_strided_slice %518 {offsets = [2, 0], sizes = [2, 64], strides = [1, 1]} : vector<16x64xf32> to vector<2x64xf32>
    %528 = arith.mulf %527, %526 : vector<2x64xf32>
    %529 = vector.extract_strided_slice %521 {offsets = [2, 0], sizes = [2, 64], strides = [1, 1]} : vector<16x64xf32> to vector<2x64xf32>
    %530 = arith.addf %528, %529 : vector<2x64xf32>
    %531 = vector.extract_strided_slice %518 {offsets = [4, 0], sizes = [2, 64], strides = [1, 1]} : vector<16x64xf32> to vector<2x64xf32>
    %532 = arith.mulf %531, %530 : vector<2x64xf32>
    %533 = vector.extract_strided_slice %521 {offsets = [4, 0], sizes = [2, 64], strides = [1, 1]} : vector<16x64xf32> to vector<2x64xf32>
    %534 = arith.addf %532, %533 : vector<2x64xf32>
    %535 = vector.extract_strided_slice %518 {offsets = [6, 0], sizes = [2, 64], strides = [1, 1]} : vector<16x64xf32> to vector<2x64xf32>
    %536 = arith.mulf %535, %534 : vector<2x64xf32>
    %537 = vector.extract_strided_slice %521 {offsets = [6, 0], sizes = [2, 64], strides = [1, 1]} : vector<16x64xf32> to vector<2x64xf32>
    %538 = arith.addf %536, %537 : vector<2x64xf32>
    %539 = vector.extract_strided_slice %518 {offsets = [8, 0], sizes = [2, 64], strides = [1, 1]} : vector<16x64xf32> to vector<2x64xf32>
    %540 = arith.mulf %539, %538 : vector<2x64xf32>
    %541 = vector.extract_strided_slice %521 {offsets = [8, 0], sizes = [2, 64], strides = [1, 1]} : vector<16x64xf32> to vector<2x64xf32>
    %542 = arith.addf %540, %541 : vector<2x64xf32>
    %543 = vector.extract_strided_slice %518 {offsets = [10, 0], sizes = [2, 64], strides = [1, 1]} : vector<16x64xf32> to vector<2x64xf32>
    %544 = arith.mulf %543, %542 : vector<2x64xf32>
    %545 = vector.extract_strided_slice %521 {offsets = [10, 0], sizes = [2, 64], strides = [1, 1]} : vector<16x64xf32> to vector<2x64xf32>
    %546 = arith.addf %544, %545 : vector<2x64xf32>
    %547 = vector.extract_strided_slice %518 {offsets = [12, 0], sizes = [2, 64], strides = [1, 1]} : vector<16x64xf32> to vector<2x64xf32>
    %548 = arith.mulf %547, %546 : vector<2x64xf32>
    %549 = vector.extract_strided_slice %521 {offsets = [12, 0], sizes = [2, 64], strides = [1, 1]} : vector<16x64xf32> to vector<2x64xf32>
    %550 = arith.addf %548, %549 : vector<2x64xf32>
    %551 = vector.extract_strided_slice %518 {offsets = [14, 0], sizes = [2, 64], strides = [1, 1]} : vector<16x64xf32> to vector<2x64xf32>
    %552 = arith.mulf %551, %550 : vector<2x64xf32>
    %553 = vector.extract_strided_slice %521 {offsets = [14, 0], sizes = [2, 64], strides = [1, 1]} : vector<16x64xf32> to vector<2x64xf32>
    %554 = arith.addf %552, %553 : vector<2x64xf32>
    %555 = vector.extract_strided_slice %68 {offsets = [0, 10], sizes = [2, 1], strides = [1, 1]} : vector<2x16xf32> to vector<2x1xf32>
    %556 = vector.broadcast %555 : vector<2x1xf32> to vector<2x64xf32>
    %557 = arith.mulf %556, %554 : vector<2x64xf32>
    %558 = arith.addf %514, %557 : vector<2x64xf32>
    %559 = vector.extract_strided_slice %72 {offsets = [11, 0], sizes = [1, 64], strides = [1, 1]} : vector<16x64xf32> to vector<1x64xf32>
    %560 = vector.broadcast %559 : vector<1x64xf32> to vector<16x64xf32>
    %561 = arith.mulf %66, %560 : vector<16x64xf32>
    %562 = math.exp %561 : vector<16x64xf32>
    %563 = vector.extract_strided_slice %67 {offsets = [0, 11], sizes = [16, 1], strides = [1, 1]} : vector<16x16xf32> to vector<16x1xf32>
    %564 = vector.broadcast %563 : vector<16x1xf32> to vector<16x64xf32>
    %565 = arith.mulf %564, %73 : vector<16x64xf32>
    %cst_45 = arith.constant 0.000000e+00 : f32
    %566 = vector.broadcast %cst_45 : f32 to vector<2x64xf32>
    %567 = vector.extract_strided_slice %562 {offsets = [0, 0], sizes = [2, 64], strides = [1, 1]} : vector<16x64xf32> to vector<2x64xf32>
    %568 = arith.mulf %567, %566 : vector<2x64xf32>
    %569 = vector.extract_strided_slice %565 {offsets = [0, 0], sizes = [2, 64], strides = [1, 1]} : vector<16x64xf32> to vector<2x64xf32>
    %570 = arith.addf %568, %569 : vector<2x64xf32>
    %571 = vector.extract_strided_slice %562 {offsets = [2, 0], sizes = [2, 64], strides = [1, 1]} : vector<16x64xf32> to vector<2x64xf32>
    %572 = arith.mulf %571, %570 : vector<2x64xf32>
    %573 = vector.extract_strided_slice %565 {offsets = [2, 0], sizes = [2, 64], strides = [1, 1]} : vector<16x64xf32> to vector<2x64xf32>
    %574 = arith.addf %572, %573 : vector<2x64xf32>
    %575 = vector.extract_strided_slice %562 {offsets = [4, 0], sizes = [2, 64], strides = [1, 1]} : vector<16x64xf32> to vector<2x64xf32>
    %576 = arith.mulf %575, %574 : vector<2x64xf32>
    %577 = vector.extract_strided_slice %565 {offsets = [4, 0], sizes = [2, 64], strides = [1, 1]} : vector<16x64xf32> to vector<2x64xf32>
    %578 = arith.addf %576, %577 : vector<2x64xf32>
    %579 = vector.extract_strided_slice %562 {offsets = [6, 0], sizes = [2, 64], strides = [1, 1]} : vector<16x64xf32> to vector<2x64xf32>
    %580 = arith.mulf %579, %578 : vector<2x64xf32>
    %581 = vector.extract_strided_slice %565 {offsets = [6, 0], sizes = [2, 64], strides = [1, 1]} : vector<16x64xf32> to vector<2x64xf32>
    %582 = arith.addf %580, %581 : vector<2x64xf32>
    %583 = vector.extract_strided_slice %562 {offsets = [8, 0], sizes = [2, 64], strides = [1, 1]} : vector<16x64xf32> to vector<2x64xf32>
    %584 = arith.mulf %583, %582 : vector<2x64xf32>
    %585 = vector.extract_strided_slice %565 {offsets = [8, 0], sizes = [2, 64], strides = [1, 1]} : vector<16x64xf32> to vector<2x64xf32>
    %586 = arith.addf %584, %585 : vector<2x64xf32>
    %587 = vector.extract_strided_slice %562 {offsets = [10, 0], sizes = [2, 64], strides = [1, 1]} : vector<16x64xf32> to vector<2x64xf32>
    %588 = arith.mulf %587, %586 : vector<2x64xf32>
    %589 = vector.extract_strided_slice %565 {offsets = [10, 0], sizes = [2, 64], strides = [1, 1]} : vector<16x64xf32> to vector<2x64xf32>
    %590 = arith.addf %588, %589 : vector<2x64xf32>
    %591 = vector.extract_strided_slice %562 {offsets = [12, 0], sizes = [2, 64], strides = [1, 1]} : vector<16x64xf32> to vector<2x64xf32>
    %592 = arith.mulf %591, %590 : vector<2x64xf32>
    %593 = vector.extract_strided_slice %565 {offsets = [12, 0], sizes = [2, 64], strides = [1, 1]} : vector<16x64xf32> to vector<2x64xf32>
    %594 = arith.addf %592, %593 : vector<2x64xf32>
    %595 = vector.extract_strided_slice %562 {offsets = [14, 0], sizes = [2, 64], strides = [1, 1]} : vector<16x64xf32> to vector<2x64xf32>
    %596 = arith.mulf %595, %594 : vector<2x64xf32>
    %597 = vector.extract_strided_slice %565 {offsets = [14, 0], sizes = [2, 64], strides = [1, 1]} : vector<16x64xf32> to vector<2x64xf32>
    %598 = arith.addf %596, %597 : vector<2x64xf32>
    %599 = vector.extract_strided_slice %68 {offsets = [0, 11], sizes = [2, 1], strides = [1, 1]} : vector<2x16xf32> to vector<2x1xf32>
    %600 = vector.broadcast %599 : vector<2x1xf32> to vector<2x64xf32>
    %601 = arith.mulf %600, %598 : vector<2x64xf32>
    %602 = arith.addf %558, %601 : vector<2x64xf32>
    %603 = vector.extract_strided_slice %72 {offsets = [12, 0], sizes = [1, 64], strides = [1, 1]} : vector<16x64xf32> to vector<1x64xf32>
    %604 = vector.broadcast %603 : vector<1x64xf32> to vector<16x64xf32>
    %605 = arith.mulf %66, %604 : vector<16x64xf32>
    %606 = math.exp %605 : vector<16x64xf32>
    %607 = vector.extract_strided_slice %67 {offsets = [0, 12], sizes = [16, 1], strides = [1, 1]} : vector<16x16xf32> to vector<16x1xf32>
    %608 = vector.broadcast %607 : vector<16x1xf32> to vector<16x64xf32>
    %609 = arith.mulf %608, %73 : vector<16x64xf32>
    %cst_46 = arith.constant 0.000000e+00 : f32
    %610 = vector.broadcast %cst_46 : f32 to vector<2x64xf32>
    %611 = vector.extract_strided_slice %606 {offsets = [0, 0], sizes = [2, 64], strides = [1, 1]} : vector<16x64xf32> to vector<2x64xf32>
    %612 = arith.mulf %611, %610 : vector<2x64xf32>
    %613 = vector.extract_strided_slice %609 {offsets = [0, 0], sizes = [2, 64], strides = [1, 1]} : vector<16x64xf32> to vector<2x64xf32>
    %614 = arith.addf %612, %613 : vector<2x64xf32>
    %615 = vector.extract_strided_slice %606 {offsets = [2, 0], sizes = [2, 64], strides = [1, 1]} : vector<16x64xf32> to vector<2x64xf32>
    %616 = arith.mulf %615, %614 : vector<2x64xf32>
    %617 = vector.extract_strided_slice %609 {offsets = [2, 0], sizes = [2, 64], strides = [1, 1]} : vector<16x64xf32> to vector<2x64xf32>
    %618 = arith.addf %616, %617 : vector<2x64xf32>
    %619 = vector.extract_strided_slice %606 {offsets = [4, 0], sizes = [2, 64], strides = [1, 1]} : vector<16x64xf32> to vector<2x64xf32>
    %620 = arith.mulf %619, %618 : vector<2x64xf32>
    %621 = vector.extract_strided_slice %609 {offsets = [4, 0], sizes = [2, 64], strides = [1, 1]} : vector<16x64xf32> to vector<2x64xf32>
    %622 = arith.addf %620, %621 : vector<2x64xf32>
    %623 = vector.extract_strided_slice %606 {offsets = [6, 0], sizes = [2, 64], strides = [1, 1]} : vector<16x64xf32> to vector<2x64xf32>
    %624 = arith.mulf %623, %622 : vector<2x64xf32>
    %625 = vector.extract_strided_slice %609 {offsets = [6, 0], sizes = [2, 64], strides = [1, 1]} : vector<16x64xf32> to vector<2x64xf32>
    %626 = arith.addf %624, %625 : vector<2x64xf32>
    %627 = vector.extract_strided_slice %606 {offsets = [8, 0], sizes = [2, 64], strides = [1, 1]} : vector<16x64xf32> to vector<2x64xf32>
    %628 = arith.mulf %627, %626 : vector<2x64xf32>
    %629 = vector.extract_strided_slice %609 {offsets = [8, 0], sizes = [2, 64], strides = [1, 1]} : vector<16x64xf32> to vector<2x64xf32>
    %630 = arith.addf %628, %629 : vector<2x64xf32>
    %631 = vector.extract_strided_slice %606 {offsets = [10, 0], sizes = [2, 64], strides = [1, 1]} : vector<16x64xf32> to vector<2x64xf32>
    %632 = arith.mulf %631, %630 : vector<2x64xf32>
    %633 = vector.extract_strided_slice %609 {offsets = [10, 0], sizes = [2, 64], strides = [1, 1]} : vector<16x64xf32> to vector<2x64xf32>
    %634 = arith.addf %632, %633 : vector<2x64xf32>
    %635 = vector.extract_strided_slice %606 {offsets = [12, 0], sizes = [2, 64], strides = [1, 1]} : vector<16x64xf32> to vector<2x64xf32>
    %636 = arith.mulf %635, %634 : vector<2x64xf32>
    %637 = vector.extract_strided_slice %609 {offsets = [12, 0], sizes = [2, 64], strides = [1, 1]} : vector<16x64xf32> to vector<2x64xf32>
    %638 = arith.addf %636, %637 : vector<2x64xf32>
    %639 = vector.extract_strided_slice %606 {offsets = [14, 0], sizes = [2, 64], strides = [1, 1]} : vector<16x64xf32> to vector<2x64xf32>
    %640 = arith.mulf %639, %638 : vector<2x64xf32>
    %641 = vector.extract_strided_slice %609 {offsets = [14, 0], sizes = [2, 64], strides = [1, 1]} : vector<16x64xf32> to vector<2x64xf32>
    %642 = arith.addf %640, %641 : vector<2x64xf32>
    %643 = vector.extract_strided_slice %68 {offsets = [0, 12], sizes = [2, 1], strides = [1, 1]} : vector<2x16xf32> to vector<2x1xf32>
    %644 = vector.broadcast %643 : vector<2x1xf32> to vector<2x64xf32>
    %645 = arith.mulf %644, %642 : vector<2x64xf32>
    %646 = arith.addf %602, %645 : vector<2x64xf32>
    %647 = vector.extract_strided_slice %72 {offsets = [13, 0], sizes = [1, 64], strides = [1, 1]} : vector<16x64xf32> to vector<1x64xf32>
    %648 = vector.broadcast %647 : vector<1x64xf32> to vector<16x64xf32>
    %649 = arith.mulf %66, %648 : vector<16x64xf32>
    %650 = math.exp %649 : vector<16x64xf32>
    %651 = vector.extract_strided_slice %67 {offsets = [0, 13], sizes = [16, 1], strides = [1, 1]} : vector<16x16xf32> to vector<16x1xf32>
    %652 = vector.broadcast %651 : vector<16x1xf32> to vector<16x64xf32>
    %653 = arith.mulf %652, %73 : vector<16x64xf32>
    %cst_47 = arith.constant 0.000000e+00 : f32
    %654 = vector.broadcast %cst_47 : f32 to vector<2x64xf32>
    %655 = vector.extract_strided_slice %650 {offsets = [0, 0], sizes = [2, 64], strides = [1, 1]} : vector<16x64xf32> to vector<2x64xf32>
    %656 = arith.mulf %655, %654 : vector<2x64xf32>
    %657 = vector.extract_strided_slice %653 {offsets = [0, 0], sizes = [2, 64], strides = [1, 1]} : vector<16x64xf32> to vector<2x64xf32>
    %658 = arith.addf %656, %657 : vector<2x64xf32>
    %659 = vector.extract_strided_slice %650 {offsets = [2, 0], sizes = [2, 64], strides = [1, 1]} : vector<16x64xf32> to vector<2x64xf32>
    %660 = arith.mulf %659, %658 : vector<2x64xf32>
    %661 = vector.extract_strided_slice %653 {offsets = [2, 0], sizes = [2, 64], strides = [1, 1]} : vector<16x64xf32> to vector<2x64xf32>
    %662 = arith.addf %660, %661 : vector<2x64xf32>
    %663 = vector.extract_strided_slice %650 {offsets = [4, 0], sizes = [2, 64], strides = [1, 1]} : vector<16x64xf32> to vector<2x64xf32>
    %664 = arith.mulf %663, %662 : vector<2x64xf32>
    %665 = vector.extract_strided_slice %653 {offsets = [4, 0], sizes = [2, 64], strides = [1, 1]} : vector<16x64xf32> to vector<2x64xf32>
    %666 = arith.addf %664, %665 : vector<2x64xf32>
    %667 = vector.extract_strided_slice %650 {offsets = [6, 0], sizes = [2, 64], strides = [1, 1]} : vector<16x64xf32> to vector<2x64xf32>
    %668 = arith.mulf %667, %666 : vector<2x64xf32>
    %669 = vector.extract_strided_slice %653 {offsets = [6, 0], sizes = [2, 64], strides = [1, 1]} : vector<16x64xf32> to vector<2x64xf32>
    %670 = arith.addf %668, %669 : vector<2x64xf32>
    %671 = vector.extract_strided_slice %650 {offsets = [8, 0], sizes = [2, 64], strides = [1, 1]} : vector<16x64xf32> to vector<2x64xf32>
    %672 = arith.mulf %671, %670 : vector<2x64xf32>
    %673 = vector.extract_strided_slice %653 {offsets = [8, 0], sizes = [2, 64], strides = [1, 1]} : vector<16x64xf32> to vector<2x64xf32>
    %674 = arith.addf %672, %673 : vector<2x64xf32>
    %675 = vector.extract_strided_slice %650 {offsets = [10, 0], sizes = [2, 64], strides = [1, 1]} : vector<16x64xf32> to vector<2x64xf32>
    %676 = arith.mulf %675, %674 : vector<2x64xf32>
    %677 = vector.extract_strided_slice %653 {offsets = [10, 0], sizes = [2, 64], strides = [1, 1]} : vector<16x64xf32> to vector<2x64xf32>
    %678 = arith.addf %676, %677 : vector<2x64xf32>
    %679 = vector.extract_strided_slice %650 {offsets = [12, 0], sizes = [2, 64], strides = [1, 1]} : vector<16x64xf32> to vector<2x64xf32>
    %680 = arith.mulf %679, %678 : vector<2x64xf32>
    %681 = vector.extract_strided_slice %653 {offsets = [12, 0], sizes = [2, 64], strides = [1, 1]} : vector<16x64xf32> to vector<2x64xf32>
    %682 = arith.addf %680, %681 : vector<2x64xf32>
    %683 = vector.extract_strided_slice %650 {offsets = [14, 0], sizes = [2, 64], strides = [1, 1]} : vector<16x64xf32> to vector<2x64xf32>
    %684 = arith.mulf %683, %682 : vector<2x64xf32>
    %685 = vector.extract_strided_slice %653 {offsets = [14, 0], sizes = [2, 64], strides = [1, 1]} : vector<16x64xf32> to vector<2x64xf32>
    %686 = arith.addf %684, %685 : vector<2x64xf32>
    %687 = vector.extract_strided_slice %68 {offsets = [0, 13], sizes = [2, 1], strides = [1, 1]} : vector<2x16xf32> to vector<2x1xf32>
    %688 = vector.broadcast %687 : vector<2x1xf32> to vector<2x64xf32>
    %689 = arith.mulf %688, %686 : vector<2x64xf32>
    %690 = arith.addf %646, %689 : vector<2x64xf32>
    %691 = vector.extract_strided_slice %72 {offsets = [14, 0], sizes = [1, 64], strides = [1, 1]} : vector<16x64xf32> to vector<1x64xf32>
    %692 = vector.broadcast %691 : vector<1x64xf32> to vector<16x64xf32>
    %693 = arith.mulf %66, %692 : vector<16x64xf32>
    %694 = math.exp %693 : vector<16x64xf32>
    %695 = vector.extract_strided_slice %67 {offsets = [0, 14], sizes = [16, 1], strides = [1, 1]} : vector<16x16xf32> to vector<16x1xf32>
    %696 = vector.broadcast %695 : vector<16x1xf32> to vector<16x64xf32>
    %697 = arith.mulf %696, %73 : vector<16x64xf32>
    %cst_48 = arith.constant 0.000000e+00 : f32
    %698 = vector.broadcast %cst_48 : f32 to vector<2x64xf32>
    %699 = vector.extract_strided_slice %694 {offsets = [0, 0], sizes = [2, 64], strides = [1, 1]} : vector<16x64xf32> to vector<2x64xf32>
    %700 = arith.mulf %699, %698 : vector<2x64xf32>
    %701 = vector.extract_strided_slice %697 {offsets = [0, 0], sizes = [2, 64], strides = [1, 1]} : vector<16x64xf32> to vector<2x64xf32>
    %702 = arith.addf %700, %701 : vector<2x64xf32>
    %703 = vector.extract_strided_slice %694 {offsets = [2, 0], sizes = [2, 64], strides = [1, 1]} : vector<16x64xf32> to vector<2x64xf32>
    %704 = arith.mulf %703, %702 : vector<2x64xf32>
    %705 = vector.extract_strided_slice %697 {offsets = [2, 0], sizes = [2, 64], strides = [1, 1]} : vector<16x64xf32> to vector<2x64xf32>
    %706 = arith.addf %704, %705 : vector<2x64xf32>
    %707 = vector.extract_strided_slice %694 {offsets = [4, 0], sizes = [2, 64], strides = [1, 1]} : vector<16x64xf32> to vector<2x64xf32>
    %708 = arith.mulf %707, %706 : vector<2x64xf32>
    %709 = vector.extract_strided_slice %697 {offsets = [4, 0], sizes = [2, 64], strides = [1, 1]} : vector<16x64xf32> to vector<2x64xf32>
    %710 = arith.addf %708, %709 : vector<2x64xf32>
    %711 = vector.extract_strided_slice %694 {offsets = [6, 0], sizes = [2, 64], strides = [1, 1]} : vector<16x64xf32> to vector<2x64xf32>
    %712 = arith.mulf %711, %710 : vector<2x64xf32>
    %713 = vector.extract_strided_slice %697 {offsets = [6, 0], sizes = [2, 64], strides = [1, 1]} : vector<16x64xf32> to vector<2x64xf32>
    %714 = arith.addf %712, %713 : vector<2x64xf32>
    %715 = vector.extract_strided_slice %694 {offsets = [8, 0], sizes = [2, 64], strides = [1, 1]} : vector<16x64xf32> to vector<2x64xf32>
    %716 = arith.mulf %715, %714 : vector<2x64xf32>
    %717 = vector.extract_strided_slice %697 {offsets = [8, 0], sizes = [2, 64], strides = [1, 1]} : vector<16x64xf32> to vector<2x64xf32>
    %718 = arith.addf %716, %717 : vector<2x64xf32>
    %719 = vector.extract_strided_slice %694 {offsets = [10, 0], sizes = [2, 64], strides = [1, 1]} : vector<16x64xf32> to vector<2x64xf32>
    %720 = arith.mulf %719, %718 : vector<2x64xf32>
    %721 = vector.extract_strided_slice %697 {offsets = [10, 0], sizes = [2, 64], strides = [1, 1]} : vector<16x64xf32> to vector<2x64xf32>
    %722 = arith.addf %720, %721 : vector<2x64xf32>
    %723 = vector.extract_strided_slice %694 {offsets = [12, 0], sizes = [2, 64], strides = [1, 1]} : vector<16x64xf32> to vector<2x64xf32>
    %724 = arith.mulf %723, %722 : vector<2x64xf32>
    %725 = vector.extract_strided_slice %697 {offsets = [12, 0], sizes = [2, 64], strides = [1, 1]} : vector<16x64xf32> to vector<2x64xf32>
    %726 = arith.addf %724, %725 : vector<2x64xf32>
    %727 = vector.extract_strided_slice %694 {offsets = [14, 0], sizes = [2, 64], strides = [1, 1]} : vector<16x64xf32> to vector<2x64xf32>
    %728 = arith.mulf %727, %726 : vector<2x64xf32>
    %729 = vector.extract_strided_slice %697 {offsets = [14, 0], sizes = [2, 64], strides = [1, 1]} : vector<16x64xf32> to vector<2x64xf32>
    %730 = arith.addf %728, %729 : vector<2x64xf32>
    %731 = vector.extract_strided_slice %68 {offsets = [0, 14], sizes = [2, 1], strides = [1, 1]} : vector<2x16xf32> to vector<2x1xf32>
    %732 = vector.broadcast %731 : vector<2x1xf32> to vector<2x64xf32>
    %733 = arith.mulf %732, %730 : vector<2x64xf32>
    %734 = arith.addf %690, %733 : vector<2x64xf32>
    %735 = vector.extract_strided_slice %72 {offsets = [15, 0], sizes = [1, 64], strides = [1, 1]} : vector<16x64xf32> to vector<1x64xf32>
    %736 = vector.broadcast %735 : vector<1x64xf32> to vector<16x64xf32>
    %737 = arith.mulf %66, %736 : vector<16x64xf32>
    %738 = math.exp %737 : vector<16x64xf32>
    %739 = vector.extract_strided_slice %67 {offsets = [0, 15], sizes = [16, 1], strides = [1, 1]} : vector<16x16xf32> to vector<16x1xf32>
    %740 = vector.broadcast %739 : vector<16x1xf32> to vector<16x64xf32>
    %741 = arith.mulf %740, %73 : vector<16x64xf32>
    %cst_49 = arith.constant 0.000000e+00 : f32
    %742 = vector.broadcast %cst_49 : f32 to vector<2x64xf32>
    %743 = vector.extract_strided_slice %738 {offsets = [0, 0], sizes = [2, 64], strides = [1, 1]} : vector<16x64xf32> to vector<2x64xf32>
    %744 = arith.mulf %743, %742 : vector<2x64xf32>
    %745 = vector.extract_strided_slice %741 {offsets = [0, 0], sizes = [2, 64], strides = [1, 1]} : vector<16x64xf32> to vector<2x64xf32>
    %746 = arith.addf %744, %745 : vector<2x64xf32>
    %747 = vector.extract_strided_slice %738 {offsets = [2, 0], sizes = [2, 64], strides = [1, 1]} : vector<16x64xf32> to vector<2x64xf32>
    %748 = arith.mulf %747, %746 : vector<2x64xf32>
    %749 = vector.extract_strided_slice %741 {offsets = [2, 0], sizes = [2, 64], strides = [1, 1]} : vector<16x64xf32> to vector<2x64xf32>
    %750 = arith.addf %748, %749 : vector<2x64xf32>
    %751 = vector.extract_strided_slice %738 {offsets = [4, 0], sizes = [2, 64], strides = [1, 1]} : vector<16x64xf32> to vector<2x64xf32>
    %752 = arith.mulf %751, %750 : vector<2x64xf32>
    %753 = vector.extract_strided_slice %741 {offsets = [4, 0], sizes = [2, 64], strides = [1, 1]} : vector<16x64xf32> to vector<2x64xf32>
    %754 = arith.addf %752, %753 : vector<2x64xf32>
    %755 = vector.extract_strided_slice %738 {offsets = [6, 0], sizes = [2, 64], strides = [1, 1]} : vector<16x64xf32> to vector<2x64xf32>
    %756 = arith.mulf %755, %754 : vector<2x64xf32>
    %757 = vector.extract_strided_slice %741 {offsets = [6, 0], sizes = [2, 64], strides = [1, 1]} : vector<16x64xf32> to vector<2x64xf32>
    %758 = arith.addf %756, %757 : vector<2x64xf32>
    %759 = vector.extract_strided_slice %738 {offsets = [8, 0], sizes = [2, 64], strides = [1, 1]} : vector<16x64xf32> to vector<2x64xf32>
    %760 = arith.mulf %759, %758 : vector<2x64xf32>
    %761 = vector.extract_strided_slice %741 {offsets = [8, 0], sizes = [2, 64], strides = [1, 1]} : vector<16x64xf32> to vector<2x64xf32>
    %762 = arith.addf %760, %761 : vector<2x64xf32>
    %763 = vector.extract_strided_slice %738 {offsets = [10, 0], sizes = [2, 64], strides = [1, 1]} : vector<16x64xf32> to vector<2x64xf32>
    %764 = arith.mulf %763, %762 : vector<2x64xf32>
    %765 = vector.extract_strided_slice %741 {offsets = [10, 0], sizes = [2, 64], strides = [1, 1]} : vector<16x64xf32> to vector<2x64xf32>
    %766 = arith.addf %764, %765 : vector<2x64xf32>
    %767 = vector.extract_strided_slice %738 {offsets = [12, 0], sizes = [2, 64], strides = [1, 1]} : vector<16x64xf32> to vector<2x64xf32>
    %768 = arith.mulf %767, %766 : vector<2x64xf32>
    %769 = vector.extract_strided_slice %741 {offsets = [12, 0], sizes = [2, 64], strides = [1, 1]} : vector<16x64xf32> to vector<2x64xf32>
    %770 = arith.addf %768, %769 : vector<2x64xf32>
    %771 = vector.extract_strided_slice %738 {offsets = [14, 0], sizes = [2, 64], strides = [1, 1]} : vector<16x64xf32> to vector<2x64xf32>
    %772 = arith.mulf %771, %770 : vector<2x64xf32>
    %773 = vector.extract_strided_slice %741 {offsets = [14, 0], sizes = [2, 64], strides = [1, 1]} : vector<16x64xf32> to vector<2x64xf32>
    %774 = arith.addf %772, %773 : vector<2x64xf32>
    %775 = vector.extract_strided_slice %68 {offsets = [0, 15], sizes = [2, 1], strides = [1, 1]} : vector<2x16xf32> to vector<2x1xf32>
    %776 = vector.broadcast %775 : vector<2x1xf32> to vector<2x64xf32>
    %777 = arith.mulf %776, %774 : vector<2x64xf32>
    %778 = arith.addf %734, %777 : vector<2x64xf32>
    %c22 = arith.constant 22 : index
    %c0_50 = arith.constant 0 : index
    %779 = vector.load %arg6[%c22, %c0_50] : memref<23x64xf32, #tpu.memory_space<vmem>>, vector<1x64xf32>
    %780 = vector.broadcast %779 : vector<1x64xf32> to vector<2x64xf32>
    %781 = arith.mulf %780, %51 : vector<2x64xf32>
    %782 = arith.addf %778, %781 : vector<2x64xf32>
    %cst_51 = arith.constant 0.000000e+00 : f32
    %783 = vector.broadcast %cst_51 : f32 to vector<2x64xf32>
    %784 = arith.subf %783, %19 : vector<2x64xf32>
    %785 = math.exp %784 : vector<2x64xf32>
    %cst_52 = arith.constant 1.000000e+00 : f32
    %786 = vector.broadcast %cst_52 : f32 to vector<2x64xf32>
    %787 = arith.addf %786, %785 : vector<2x64xf32>
    %788 = tpu.reciprocal %787 {approx = true} : vector<2x64xf32> -> vector<2x64xf32>
    %789 = arith.mulf %19, %788 : vector<2x64xf32>
    %790 = arith.mulf %782, %789 : vector<2x64xf32>
    %cst_53 = arith.constant 0.000000e+00 : f32
    %791 = vector.broadcast %cst_53 : f32 to vector<6x64xf32>
    %792 = tpu.concatenate %790, %791 in 0 : vector<2x64xf32>, vector<6x64xf32> -> vector<8x64xf32>
    %c0_54 = arith.constant 0 : index
    %c0_55 = arith.constant 0 : index
    %793 = vector.load %arg7[%c0_54, %c0_55] : memref<65x128xf32, #tpu.memory_space<vmem>>, vector<64x128xf32>
    %c64_56 = arith.constant 64 : index
    %c0_57 = arith.constant 0 : index
    %794 = vector.load %arg7[%c64_56, %c0_57] : memref<65x128xf32, #tpu.memory_space<vmem>>, vector<1x128xf32>
    %cst_58 = arith.constant dense<0.000000e+00> : vector<8x128xf32>
    %795 = tpu.matmul %792, %793, %cst_58 {dimension_numbers = #tpu.dot_dimension_numbers<[1], [0], [0], [1], [0, 0, 1, 1], [], []>} : vector<8x64xf32>, vector<64x128xf32>, vector<8x128xf32> -> vector<8x128xf32>
    %796 = vector.broadcast %794 : vector<1x128xf32> to vector<8x128xf32>
    %797 = arith.addf %795, %796 : vector<8x128xf32>
    %c0_59 = arith.constant 0 : index
    %c0_60 = arith.constant 0 : index
    %798 = vector.load %arg8[%c0_59, %c0_60] : memref<8x128xf32, #tpu.memory_space<vmem>>, vector<8x128xf32>
    tpu.vector_store %arg8[%c0_59, %c0_60], %797 {strides = array<i32>} : memref<8x128xf32, #tpu.memory_space<vmem>>, vector<8x128xf32>,
    return
  }
  func.func @transform_0(%arg0: i32) -> (i32, i32, i32) {
    %c0_i32 = arith.constant 0 : i32
    %c0_i32_0 = arith.constant 0 : i32
    %c0_i32_1 = arith.constant 0 : i32
    return %arg0, %c0_i32, %c0_i32_0 : i32, i32, i32
  }
  func.func @transform_1(%arg0: i32) -> (i32, i32) {
    %c0_i32 = arith.constant 0 : i32
    %c0_i32_0 = arith.constant 0 : i32
    %c0_i32_1 = arith.constant 0 : i32
    return %c0_i32, %c0_i32_0 : i32, i32
  }
  func.func @transform_2(%arg0: i32) -> (i32, i32) {
    %c0_i32 = arith.constant 0 : i32
    %c0_i32_0 = arith.constant 0 : i32
    %c0_i32_1 = arith.constant 0 : i32
    return %c0_i32, %c0_i32_0 : i32, i32
  }
  func.func @transform_3(%arg0: i32) -> (i32, i32) {
    %c0_i32 = arith.constant 0 : i32
    %c0_i32_0 = arith.constant 0 : i32
    %c0_i32_1 = arith.constant 0 : i32
    return %c0_i32, %c0_i32_0 : i32, i32
  }
  func.func @transform_4(%arg0: i32) -> (i32, i32) {
    %c0_i32 = arith.constant 0 : i32
    %c0_i32_0 = arith.constant 0 : i32
    %c0_i32_1 = arith.constant 0 : i32
    return %c0_i32, %c0_i32_0 : i32, i32
  }
  func.func @transform_5(%arg0: i32) -> (i32, i32) {
    %c0_i32 = arith.constant 0 : i32
    %c0_i32_0 = arith.constant 0 : i32
    %c0_i32_1 = arith.constant 0 : i32
    return %c0_i32, %c0_i32_0 : i32, i32
  }
  func.func @transform_6(%arg0: i32) -> (i32, i32) {
    %c0_i32 = arith.constant 0 : i32
    %c0_i32_0 = arith.constant 0 : i32
    %c0_i32_1 = arith.constant 0 : i32
    return %c0_i32, %c0_i32_0 : i32, i32
  }
  func.func @transform_7(%arg0: i32) -> (i32, i32) {
    %c0_i32 = arith.constant 0 : i32
    %c0_i32_0 = arith.constant 0 : i32
    return %arg0, %c0_i32 : i32, i32
  }
}

</mosaic_0001>

<bundles_post_ra>
// kernel: latent_mamba_dqn_forward.1
= control target key start
LH: loop header
LB: loop body
LE: loop exit
PB: predicated region body
PF: predicated region fallthrough
CT: control target
= control target key end

     0   :  { %12 = vsyncpa [#allocation3], 0  ;;  %s2508_s0 = inlined_call_operand.vmem [shape: f32[1,16,16], index: 0, kind: input, shape index: {}]   ;;  %s2509_s1 = inlined_call_operand.hbm [shape: f32[17,64], index: 1, kind: input, shape index: {}]   ;;  %s2510_s2 = inlined_call_operand.vmem [shape: f32[65,32], index: 2, kind: input, shape index: {}]   ;;  %s2511_s3 = inlined_call_operand.vmem [shape: f32[32,128], index: 3, kind: input, shape index: {}]   ;;  %s2512_s4 = inlined_call_operand.hbm [shape: f32[64,128], index: 4, kind: input, shape index: {}]   ;;  %s2513_s5 = inlined_call_operand.hbm [shape: f32[23,64], index: 5, kind: input, shape index: {}]   ;;  %s2514_s6 = inlined_call_operand.vmem [shape: f32[65,128], index: 6, kind: input, shape index: {}]   ;;  %s2515_s7 = inlined_call_operand.vmem [shape: f32[8,128], index: 7, kind: output, shape index: {}]  }
   0x1   :  { %13 = vsyncpa [#allocation5], 0  ;;  %s37_s26 = sshll.u32 %s2512_s4, 4  ;;  %s1628_s27 = smov [#allocation4]   ;;  %s38_s26 = int_to_ptr.hbm [resolvable:$true] %s37_s26 }
   0x2   :  { %s39_s28 = sshll.u32 %s1628_s27, 4  ;;  %s20_s8 = sshll.u32 %s2509_s1, 4  ;;  %s40_s28 = int_to_ptr.vmem [resolvable:$true] %s39_s28  ;;  %s21_s8 = int_to_ptr.hbm [resolvable:$true] %s20_s8 }
   0x3   :  { %s1629_s9 = smov 128   ;;  %s1630_s10 = smov 8  }
   0x4   :  { %45 = dma.hbm_to_vmem [thread:$0]  %s38_s26, 1024, %s40_s28, [#allocation5], %s1629_s9, %s1629_s9, %s1630_s10  }
   0x5   :  { %s1631_s11 = smov [#allocation2]   ;;  %s50_s15 = sshll.u32 %s2513_s5, 4  ;;  %s51_s15 = int_to_ptr.hbm [resolvable:$true] %s50_s15 }
   0x6   :  { %s22_s12 = sshll.u32 %s1631_s11, 4  ;;  %s1632_s4 = smov [#allocation6]   ;;  %s23_s12 = int_to_ptr.vmem [resolvable:$true] %s22_s12 }
   0x7   :  { %28 = dma.hbm_to_vmem [thread:$0]  %s21_s8, 384, %s23_s12, [#allocation3], %s1629_s9, %s1629_s9, %s1630_s10  }
   0x8   :  { %s52_s16 = sshll.u32 %s1632_s4, 4  ;;  %s53_s16 = int_to_ptr.vmem [resolvable:$true] %s52_s16 }
   0x9   :  { %58 = dma.hbm_to_vmem [thread:$0]  %s51_s15, 384, %s53_s16, [#allocation5], %s1629_s9, %s1629_s9, %s1630_s10  }
   0xa   :  { %1624 = dma.done.wait [#allocation3], 384  }
   0xb   :  { %1625 = vsyncadd [#allocation3], 4294966912 }
   0xc   :  { %1626 = dma.done.wait [#allocation5], 1408  }
   0xd   :  { %1627 = vsyncadd [#allocation5], 4294965888  ;;  %v76_v0 = vld [vmem:[#allocation2 + $0x8] sm:$0xff]  ;;  %v75_v1 = vld [vmem:[#allocation2] sm:$0xff]  ;;  %vm79_vm0 = vcmask 130048   ;;  %vm121_vm1 = vcmask 523264  }
   0xe   :  { %100 = vmatpush.msra.mxu0 %v76_v0  ;;  %v73_v2 = vld [vmem:[%s2508_s0] sm:$0xff]  ;;  %v118_v3 = vld [vmem:[%s2510_s2 + $0x38] sm:$0xff]  ;;  %v117_v4 = vld [vmem:[%s2510_s2 + $0x30] sm:$0xff]  ;;  %vm157_vm2 = vcmask 261120   ;;  %vm189_vm3 = vcmask 1045504   ;;  %vm230_vm4 = vcmask 1043456  }
   0xf   :  { %136 = vmatpush.msra.mxu1 %v118_v3  ;;  %v116_v5 = vld [vmem:[%s2510_s2 + $0x28] sm:$0xff]  ;;  %v115_v6 = vld [vmem:[%s2510_s2 + $0x20] sm:$0xff]  ;;  %v114_v7 = vld [vmem:[%s2510_s2 + $0x18] sm:$0xff]  ;;  %vm248_vm5 = vcmask 1041408  }
  0x10   :  { %101 = vmatpush.msra.mxu0 %v75_v1  ;;  %v74_v8 = vld [vmem:[%s2508_s0 + $0x8] sm:$0xff]  ;;  %v113_v9 = vld [vmem:[%s2510_s2 + $0x10] sm:$0xff]  ;;  %v111_v11 = vld [vmem:[%s2510_s2] sm:$0xff] }
  0x11   :  { %1358 = vmatmul.msk.f32.vlgmr.msra.gmra.mxu0 %vm79_vm0, %v73_v2  ;;  %137 = vmatpush.msra.mxu1 %v117_v4  ;;  %v112_v10 = vld [vmem:[%s2510_s2 + $0x8] sm:$0xff]  ;;  %v156_v12 = vld [vmem:[%s2511_s3 + $0x18] sm:$0xff]  ;;  %v1454_v13 = vld [vmem:[#allocation2 + $0x10] ss:$0 sm:$0xff] }
  0x12   :  { %176 = vmatpush.msra.mxu2 %v156_v12  ;;  %v155_v20 = vld [vmem:[%s2511_s3 + $0x10] sm:$0xff]  ;;  %v154_v21 = vld [vmem:[%s2511_s3 + $0x8] sm:$0xff]  ;;  %v153_v22 = vld [vmem:[%s2511_s3] sm:$0xff] }
  0x13   :  { %138 = vmatpush.msra.mxu1 %v116_v5  ;;  %v1455_v23 = vld [vmem:[%s2510_s2 + $0x40] ss:$0 sm:$0xff]  ;;  %v277_v30 = vld [vmem:[#allocation4 + $0x38] sm:$0xff]  ;;  %v276_v31 = vld [vmem:[#allocation4 + $0x30] sm:$0xff]  ;;  %s1665_s2 = smov 64  }
  0x14   :  { %177 = vmatpush.msra.mxu2 %v155_v20  ;;  %292 = vmatpush.msra.mxu3 %v277_v30  ;;  %v275_v33 = vld [vmem:[#allocation4 + $0x28] sm:$0xff]  ;;  %v274_v35 = vld [vmem:[#allocation4 + $0x20] sm:$0xff]  ;;  %v273_v36 = vld [vmem:[#allocation4 + $0x18] sm:$0xff] }
  0x15   :  { %139 = vmatpush.msra.mxu1 %v115_v6  ;;  %v1458_v37 = vld [vmem:[#allocation6 + $0x11] ss:$0 sm:$0xff]  ;;  %v1456_v39 = vld [vmem:[#allocation6 + $0x10] ss:$0 sm:$0xff]  ;;  %v1459_v41 = vld [vmem:[#allocation6 + $0x12] ss:$0 sm:$0xff] }
  0x16   :  { %178 = vmatpush.msra.mxu2 %v154_v21  ;;  %293 = vmatpush.msra.mxu3 %v276_v31  ;;  %v272_v40 = vld [vmem:[#allocation4 + $0x10] sm:$0xff]  ;;  %v271_v43 = vld [vmem:[#allocation4 + $0x8] sm:$0xff]  ;;  %v270_v48 = vld [vmem:[#allocation4] sm:$0xff] }
  0x17   :  { %140 = vmatpush.msra.mxu1 %v114_v7  ;;  %v1460_v45 = vld [vmem:[#allocation6 + $0x13] ss:$0 sm:$0xff]  ;;  %v1457_v49 = vld [vmem:[#allocation6 + $0x14] ss:$0 sm:$0xff] }
  0x18   :  { %179 = vmatpush.msra.mxu2 %v153_v22  ;;  %294 = vmatpush.msra.mxu3 %v275_v33  ;;  %v1634_v22 = vmov 65  }
  0x19   :  { %1359 = vmatmul.msk.f32.gmra.mxu0 %vm79_vm0, %v74_v8  ;;  %141 = vmatpush.msra.mxu1 %v113_v9 }
  0x1a   :  { %295 = vmatpush.msra.mxu3 %v274_v35  ;;  %1406 = vset.pattern.permute.xlu1 %v1634_v22  ;;  %v1636_v35 = vmov 69  }
  0x1b   :  { %142 = vmatpush.msra.mxu1 %v112_v10 }
  0x1c   :  { %296 = vmatpush.msra.mxu3 %v273_v36  ;;  %v1637_v36 = vmov 68  }
  0x1d   :  { %143 = vmatpush.msra.mxu1 %v111_v11 }
  0x1e   :  { %297 = vmatpush.msra.mxu3 %v272_v40  ;;  %v1641_v40 = vmov 70  }
  0x20   :  { %298 = vmatpush.msra.mxu3 %v271_v43  ;;  %v1643_v43 = vmov 73  }
  0x22   :  { %299 = vmatpush.msra.mxu3 %v270_v48 }
  0x8e   :  { %v103_v14 = vpop.f32.mrf.mxu0 }
  0x8f   :  { %v104_v15 = vadd.f32 %v1454_v13, %v103_v14 }
  0x91   :  { %v109_v16 = vmax.f32 %v104_v15, 0.0 }
  0x93   :  { %1360 = vmatmul.msk.f32.vlgmr.msra.gmra.mxu1 %vm121_vm1, %v109_v16 }
  0x96   :  { %v106_v17 = vpop.f32.mrf.mxu0 }
  0x97   :  { %v107_v18 = vadd.f32 %v1454_v13, %v106_v17 }
  0x99   :  { %v110_v19 = vmax.f32 %v107_v18, 0.0 }
  0x9b   :  { %1361 = vmatmul.msk.f32.gmra.mxu1 %vm121_vm1, %v110_v19  ;;  %v1633_v19 = vmov 67  }
  0x9c   :  { %1408 = vset.pattern.permute.xlu2 %v1633_v19 }
 0x110   :  { %v145_v24 = vpop.f32.mrf.mxu1 }
 0x111   :  { %v146_v25 = vadd.f32 %v1455_v23, %v145_v24 }
 0x113   :  { %v151_v26 = vmax.f32 %v146_v25, 0.0 }
 0x115   :  { %1362 = vmatmul.msk.f32.vlgmr.msra.gmra.mxu2 %vm157_vm2, %v151_v26 }
 0x118   :  { %v148_v27 = vpop.f32.mrf.mxu1 }
 0x119   :  { %v149_v28 = vadd.f32 %v1455_v23, %v148_v27  ;;  %v1635_v23 = vmov 64  }
 0x11a   :  { %1405 = vset.pattern.permute.xlu0 %v1635_v23 }
 0x11b   :  { %v152_v29 = vmax.f32 %v149_v28, 0.0 }
 0x11d   :  { %1363 = vmatmul.msk.f32.gmra.mxu2 %vm157_vm2, %v152_v29 }
 0x198   :  { %v181_v32 = vpop.f32.mrf.mxu2 }
 0x199   :  { %v190_v34 = vrot.slane %v181_v32, 2 }
 0x19b   :  { %v196_v38 = vsel %vm189_vm3, 0.0, %v190_v34 }
 0x19c   :  { %v207_v44 = vmul.f32 %v1458_v37, %v196_v38  ;;  %v200_v47 = vmul.f32 %v1456_v39, %v196_v38  ;;  %v224_v50 = vmul.f32 %v1459_v41, %v196_v38  ;;  %v242_v59 = vmul.f32 %v1460_v45, %v196_v38 }
 0x19d   :  { %v1639_v38 = vmov 72  }
 0x19e   :  { %v213_v58 = vrot.slane %v207_v44, 2  ;;  %v203_v2 = vadd.f32 %v1457_v49, %v200_v47  ;;  %v231_v3 = vrot.slane %v224_v50, 4  ;;  %v249_v10 = vrot.slane %v242_v59, 6 }
 0x19f   :  { %v1644_v44 = vmov 75   ;;  %v1645_v47 = vmov 77   ;;  %v1647_v50 = vmov 79   ;;  %v1650_v59 = vmov 81  }
 0x1a0   :  { %v1763_v42 = vpop.f32.mrf.mxu2 }
 0x1a1   :  { %v191_v46 = vrot.slane %v1763_v42, 2 }
 0x1a3   :  { %v192_v51 = vsel %vm189_vm3, %v190_v34, %v191_v46  ;;  %v209_v52 = vmul.f32 %v1458_v37, %v191_v46  ;;  %v226_v53 = vmul.f32 %v1459_v41, %v191_v46  ;;  %v244_v57 = vmul.f32 %v1460_v45, %v191_v46 }
 0x1a4   :  { %v201_v54 = vmul.f32 %v1456_v39, %v192_v51  ;;  %v208_v55 = vmul.f32 %v1458_v37, %v192_v51  ;;  %v225_v56 = vmul.f32 %v1459_v41, %v192_v51  ;;  %v243_v61 = vmul.f32 %v1460_v45, %v192_v51  ;;  %v1789_v45 = vld [vmem:[#allocation6 + $0x15] ss:$0 sm:$0xff] }
 0x1a5   :  { %v216_v60 = vrot.slane %v209_v52, 2  ;;  %v234_v63 = vrot.slane %v226_v53, 4  ;;  %v252_v4 = vrot.slane %v244_v57, 6  ;;  %v1638_v37 = vmov 66  }
 0x1a6   :  { %v214_v62 = vrot.slane %v208_v55, 2  ;;  %v232_v0 = vrot.slane %v225_v56, 4  ;;  %v204_v1 = vadd.f32 %v1457_v49, %v201_v54  ;;  %v250_v6 = vrot.slane %v243_v61, 6  ;;  %v327_v54 = vld [vmem:[#allocation6] sm:$0xff] }
 0x1a7   :  { %v1640_v39 = vmov 71   ;;  %v1642_v41 = vmov 74   ;;  %v1646_v49 = vmov 76   ;;  %v1648_v52 = vmov 78  }
 0x1a8   :  { %v215_v5 = vsel %vm189_vm3, %v213_v58, %v214_v62  ;;  %v217_v7 = vsel %vm189_vm3, %v214_v62, %v216_v60  ;;  %v233_v11 = vsel %vm230_vm4, %v231_v3, %v232_v0  ;;  %v235_v12 = vsel %vm230_vm4, %v232_v0, %v234_v63 }
 0x1a9   :  { %v220_v8 = vadd.f32 %v215_v5, %v203_v2  ;;  %v221_v9 = vadd.f32 %v217_v7, %v204_v1  ;;  %v251_v15 = vsel %vm248_vm5, %v249_v10, %v250_v6  ;;  %v253_v16 = vsel %vm248_vm5, %v250_v6, %v252_v4  ;;  %v328_v1 = vld [vmem:[#allocation6 + $0x8] sm:$0xff] }
 0x1aa   :  { %v329_v56 = vmul.f32 1.442695, %v327_v54  ;;  %v1649_v58 = vmov 80   ;;  %v1651_v62 = vmov 82   ;;  %v331_v4 = vmul.f32 1.442695, %v328_v1 }
 0x1ab   :  { %v238_v13 = vadd.f32 %v233_v11, %v220_v8  ;;  %v239_v14 = vadd.f32 %v235_v12, %v221_v9  ;;  %v1652_v10 = vmov 89  }
 0x1ad   :  { %v256_v17 = vadd.f32 %v251_v15, %v238_v13  ;;  %v257_v18 = vadd.f32 %v253_v16, %v239_v14 }
 0x1af   :  { %v258_v20 = vsub.f32 0.0, %v256_v17  ;;  %v259_v21 = vsub.f32 0.0, %v257_v18 }
 0x1b1   :  { %v260_v24 = vmul.f32 1.442695, %v258_v20  ;;  %v262_v25 = vmul.f32 1.442695, %v259_v21 }
 0x1b3   :  { %1464 = vpow2.f32 %v260_v24  ;;  %v1653_v24 = vmov 94  }
 0x1b4   :  { %1466 = vpow2.f32 %v262_v25 }
 0x1b9   :  { %v1465_v26 = vpop.eup %1464 }
 0x1ba   :  { %v264_v27 = vadd.f32 1.0, %v1465_v26  ;;  %v1467_v28 = vpop.eup %1466 }
 0x1bb   :  { %v265_v29 = vadd.f32 1.0, %v1467_v28 }
 0x1bc   :  { %1468 = vrcp.f32 %v264_v27 }
 0x1bd   :  { %1470 = vrcp.f32 %v265_v29 }
 0x1c2   :  { %v1469_v30 = vpop.eup %1468 }
 0x1c3   :  { %v1774_v31 = vmul.f32 %v1469_v30, %v256_v17  ;;  %v1471_v32 = vpop.eup %1470 }
 0x1c4   :  { %v1778_v33 = vmul.f32 %v1471_v32, %v257_v18 }
 0x1c5   :  { %1364 = vmatmul.msk.f32.vlgmr.msra.gmra.mxu3 %vm121_vm1, %v1774_v31 }
 0x1cd   :  { %1365 = vmatmul.msk.f32.gmra.mxu3 %vm121_vm1, %v1778_v33 }
 0x248   :  { %v301_v34 = vpop.f32.mrf.mxu3 }
 0x249   :  { %527 = vperm.xlu2 %1408, %v301_v34   ;;  %407 = vperm.xlu1 %1406, %v301_v34   ;;  %v309_v46 = vadd.f32 %v1789_v45, %v301_v34 }
 0x24a   :  { %346 = vperm.xlu0 %1405, %v301_v34  }
 0x24b   :  { %v313_v48 = vmin.f32 %v309_v46, 20.0  ;;  %vm311_vm6 = vcmp.gt.f32.partialorder %v309_v46, 20.0 }
 0x24d   :  { %v315_v51 = vmul.f32 1.442695, %v313_v48 }
 0x24f   :  { %1472 = vpow2.f32 %v315_v51 }
 0x250   :  { %v1796_v53 = vpop.f32.mrf.mxu3  ;;  %1474 = vpow2.f32 %v329_v56 }
 0x251   :  { %1410 = vset.pattern.permute.xlu2 %v1636_v35  ;;  %1409 = vset.pattern.permute.xlu1 %v1637_v36  ;;  %v1832_v12 = vadd.f32 %v1789_v45, %v1796_v53 }
 0x252   :  { %1407 = vset.pattern.permute.xlu0 %v1638_v37  ;;  %647 = vperm.xlu2 %1410, %v301_v34  }
 0x253   :  { %587 = vperm.xlu1 %1409, %v301_v34   ;;  %467 = vperm.xlu0 %1407, %v301_v34   ;;  %v314_v17 = vmin.f32 %v1832_v12, 20.0  ;;  %vm312_vm7 = vcmp.gt.f32.partialorder %v1832_v12, 20.0 }
 0x255   :  { %v1473_v55 = vpop.eup %1472 }
 0x256   :  { %v319_v57 = vadd.f32 1.0, %v1473_v55  ;;  %v1475_v60 = vpop.eup %1474 }
 0x257   :  { %v1806_v63 = vsub.f32 0.0, %v1475_v60 }
 0x258   :  { %1476 = vlog2.f32 %v319_v57 }
 0x259   :  { %v519_v2 = vperm.slane %v1806_v63, 3  ;;  %1478 = vpow2.f32 %v331_v4  ;;  %v639_v7 = vperm.slane %v1806_v63, 5  ;;  %v399_v25 = vperm.slane %v1806_v63, 1 }
 0x25a   :  { %1413 = vset.pattern.permute.xlu2 %v1639_v38  ;;  %v337_v30 = vperm.slane %v1806_v63, 0  ;;  %v1654_v4 = vmov 83  }
 0x25b   :  { %1412 = vset.pattern.permute.xlu1 %v1640_v39  ;;  %1411 = vset.pattern.permute.xlu0 %v1641_v40 }
 0x25c   :  { %827 = vperm.xlu2 %1413, %v301_v34   ;;  %767 = vperm.xlu1 %1412, %v301_v34  }
 0x25d   :  { %707 = vperm.xlu0 %1411, %v301_v34  }
 0x25e   :  { %v1477_v61 = vpop.eup %1476 }
 0x25f   :  { %v322_v0 = vmul.f32 0.6931472, %v1477_v61  ;;  %v1479_v8 = vpop.eup %1478 }
 0x260   :  { %v1828_v11 = vsub.f32 0.0, %v1479_v8  ;;  %v459_v8 = vperm.slane %v1806_v63, 2 }
 0x261   :  { %v1811_v3 = vsel %vm311_vm6, %v309_v46, %v322_v0  ;;  %v579_v46 = vperm.slane %v1806_v63, 4 }
 0x262   :  { %v520_v5 = vmul.f32 %v519_v2, %v1811_v3  ;;  %v640_v9 = vmul.f32 %v639_v7, %v1811_v3  ;;  %v1838_v15 = vmul.f32 %v1811_v3, %v1774_v31  ;;  %v819_v16 = vperm.slane %v1828_v11, 0 }
 0x263   :  { %v400_v31 = vmul.f32 %v399_v25, %v1811_v3 }
 0x264   :  { %1415 = vset.pattern.permute.xlu2 %v1642_v41  ;;  %1414 = vset.pattern.permute.xlu1 %v1643_v43  ;;  %v522_v6 = vmul.f32 1.442695, %v520_v5  ;;  %v642_v13 = vmul.f32 1.442695, %v640_v9  ;;  %v759_v9 = vperm.slane %v1806_v63, 7 }
 0x265   :  { %1416 = vset.pattern.permute.xlu0 %v1644_v44  ;;  %947 = vperm.xlu2 %1415, %v301_v34  }
 0x266   :  { %887 = vperm.xlu1 %1414, %v301_v34   ;;  %1007 = vperm.xlu0 %1416, %v301_v34   ;;  %1480 = vpow2.f32 %v522_v6 }
 0x267   :  { %1482 = vpow2.f32 %v642_v13 }
 0x26c   :  { %v1481_v14 = vpop.eup %1480 }
 0x26d   :  { %1418 = vset.pattern.permute.xlu2 %v1645_v47  ;;  %v536_v20 = vmul.f32 0.0, %v1481_v14  ;;  %v1852_v27 = vpop.eup %1482 }
 0x26e   :  { %1417 = vset.pattern.permute.xlu1 %v1646_v49  ;;  %1420 = vset.pattern.permute.xlu0 %v1647_v50 }
 0x26f   :  { %1127 = vperm.xlu2 %1418, %v301_v34   ;;  %1067 = vperm.xlu1 %1417, %v301_v34  }
 0x270   :  { %1247 = vperm.xlu0 %1420, %v301_v34  }
 0x277   :  { %1423 = vset.pattern.permute.xlu2 %v1634_v22  ;;  %1419 = vset.pattern.permute.xlu1 %v1648_v52  ;;  %v820_v22 = vmul.f32 %v819_v16, %v1811_v3 }
 0x278   :  { %1421 = vset.pattern.permute.xlu0 %v1635_v23  ;;  %1187 = vperm.xlu1 %1419, %v301_v34   ;;  %v317_v23 = vmul.f32 1.442695, %v314_v17 }
 0x279   :  { %411 = vperm.xlu2 %1423, %v1796_v53   ;;  %351 = vperm.xlu0 %1421, %v1796_v53   ;;  %v822_v29 = vmul.f32 1.442695, %v820_v22 }
 0x27a   :  { %1484 = vpow2.f32 %v317_v23 }
 0x27b   :  { %1486 = vpow2.f32 %v822_v29 }
 0x280   :  { %1422 = vset.pattern.permute.xlu1 %v1649_v58 }
 0x281   :  { %1424 = vset.pattern.permute.xlu2 %v1650_v59  ;;  %1431 = vset.pattern.permute.xlu0 %v1639_v38  ;;  %v338_v38 = vmul.f32 %v337_v30, %v1811_v3 }
 0x282   :  { %454 = vperm.xlu2 %1424, %v1796_v53   ;;  %394 = vperm.xlu1 %1422, %v1796_v53  }
 0x283   :  { %831 = vperm.xlu0 %1431, %v1796_v53  }
 0x28a   :  { %1426 = vset.pattern.permute.xlu2 %v1633_v19  ;;  %1425 = vset.pattern.permute.xlu1 %v1638_v37 }
 0x28b   :  { %1436 = vset.pattern.permute.xlu0 %v1651_v62  ;;  %531 = vperm.xlu2 %1426, %v1796_v53  }
 0x28c   :  { %471 = vperm.xlu1 %1425, %v1796_v53   ;;  %514 = vperm.xlu0 %1436, %v1796_v53  }
 0x293   :  { %1428 = vset.pattern.permute.xlu2 %v1636_v35 }
 0x294   :  { %1427 = vset.pattern.permute.xlu1 %v1637_v36  ;;  %1441 = vset.pattern.permute.xlu0 %v1647_v50  ;;  %v656_v36 = vmul.f32 0.0, %v1852_v27  ;;  %v340_v50 = vmul.f32 1.442695, %v338_v38 }
 0x295   :  { %651 = vperm.xlu2 %1428, %v1796_v53   ;;  %591 = vperm.xlu1 %1427, %v1796_v53  }
 0x296   :  { %1251 = vperm.xlu0 %1441, %v1796_v53  }
 0x29d   :  { %1430 = vset.pattern.permute.xlu2 %v1640_v39  ;;  %1429 = vset.pattern.permute.xlu1 %v1641_v40  ;;  %v402_v40 = vmul.f32 1.442695, %v400_v31 }
 0x29e   :  { %1446 = vset.pattern.permute.xlu0 %v1652_v10  ;;  %771 = vperm.xlu2 %1430, %v1796_v53  }
 0x29f   :  { %711 = vperm.xlu1 %1429, %v1796_v53   ;;  %934 = vperm.xlu0 %1446, %v1796_v53   ;;  %1488 = vpow2.f32 %v402_v40 }
 0x2a0   :  { %1490 = vpow2.f32 %v340_v50 }
 0x2a3   :  { %v528_v18 = vpop.permute.xlu2 %527 }
 0x2a4   :  { %v534_v19 = vmul.f32 %v528_v18, %v1838_v15 }
 0x2a6   :  { %1433 = vset.pattern.permute.xlu2 %v1642_v41  ;;  %v537_v21 = vadd.f32 %v536_v20, %v534_v19  ;;  %v1485_v41 = vpop.eup %1484 }
 0x2a7   :  { %1432 = vset.pattern.permute.xlu1 %v1643_v43  ;;  %1451 = vset.pattern.permute.xlu0 %v1653_v24  ;;  %v320_v54 = vadd.f32 1.0, %v1485_v41  ;;  %v1872_v55 = vpop.eup %1486 }
 0x2a8   :  { %v539_v26 = vrot.slane %v537_v21, 6  ;;  %951 = vperm.xlu2 %1433, %v1796_v53   ;;  %891 = vperm.xlu1 %1432, %v1796_v53   ;;  %v836_v61 = vmul.f32 0.0, %v1872_v55  ;;  %v1884_v0 = vpop.eup %1488 }
 0x2a9   :  { %1234 = vperm.xlu0 %1451, %v1796_v53   ;;  %1492 = vlog2.f32 %v320_v54  ;;  %v1894_v17 = vpop.eup %1490 }
 0x2aa   :  { %v541_v28 = vmul.f32 %v1481_v14, %v539_v26  ;;  %v460_v26 = vmul.f32 %v459_v8, %v1811_v3 }
 0x2ac   :  { %v542_v32 = vadd.f32 %v541_v28, %v534_v19  ;;  %v648_v34 = vpop.permute.xlu2 %647  ;;  %v760_v28 = vmul.f32 %v759_v9, %v1811_v3 }
 0x2ad   :  { %v1859_v35 = vmul.f32 %v648_v34, %v1838_v15 }
 0x2ae   :  { %v544_v37 = vrot.slane %v542_v32, 6  ;;  %v356_v32 = vmul.f32 0.0, %v1894_v17 }
 0x2af   :  { %v657_v39 = vadd.f32 %v656_v36, %v1859_v35  ;;  %v1493_v20 = vpop.eup %1492 }
 0x2b0   :  { %v546_v43 = vmul.f32 %v1481_v14, %v544_v37  ;;  %1435 = vset.pattern.permute.xlu2 %v1646_v49  ;;  %1434 = vset.pattern.permute.xlu1 %v1644_v44  ;;  %v580_v44 = vmul.f32 %v579_v46, %v1811_v3  ;;  %v324_v37 = vmul.f32 0.6931472, %v1493_v20 }
 0x2b1   :  { %v659_v45 = vrot.slane %v657_v39, 6  ;;  %1071 = vperm.xlu2 %1435, %v1796_v53   ;;  %1011 = vperm.xlu1 %1434, %v1796_v53  }
 0x2b2   :  { %v547_v48 = vadd.f32 %v546_v43, %v534_v19  ;;  %v582_v6 = vmul.f32 1.442695, %v580_v44  ;;  %v1655_v43 = vmov 84  }
 0x2b3   :  { %v661_v51 = vmul.f32 %v1852_v27, %v659_v45 }
 0x2b4   :  { %v549_v56 = vrot.slane %v547_v48, 6  ;;  %1494 = vpow2.f32 %v582_v6 }
 0x2b5   :  { %v662_v49 = vadd.f32 %v661_v51, %v1859_v35  ;;  %v1930_v51 = vsel %vm312_vm7, %v1832_v12, %v324_v37 }
 0x2b6   :  { %v551_v57 = vmul.f32 %v1481_v14, %v549_v56  ;;  %v828_v58 = vpop.permute.xlu2 %827 }
 0x2b7   :  { %v664_v59 = vrot.slane %v662_v49, 6  ;;  %v1879_v60 = vmul.f32 %v828_v58, %v1838_v15 }
 0x2b8   :  { %v1882_v62 = vadd.f32 %v551_v57, %v534_v19 }
 0x2b9   :  { %v666_v1 = vmul.f32 %v1852_v27, %v664_v59  ;;  %1438 = vset.pattern.permute.xlu2 %v1654_v4  ;;  %1437 = vset.pattern.permute.xlu1 %v1645_v47  ;;  %v837_v5 = vadd.f32 %v836_v61, %v1879_v60  ;;  %v416_v47 = vmul.f32 0.0, %v1884_v0  ;;  %v401_v61 = vmul.f32 %v399_v25, %v1930_v51 }
 0x2ba   :  { %574 = vperm.xlu2 %1438, %v1796_v53   ;;  %1131 = vperm.xlu1 %1437, %v1796_v53   ;;  %v1922_v45 = vpop.eup %1494 }
 0x2bb   :  { %v667_v10 = vadd.f32 %v666_v1, %v1859_v35  ;;  %v839_v13 = vrot.slane %v837_v5, 6  ;;  %v408_v14 = vpop.permute.xlu1 %407  ;;  %v596_v58 = vmul.f32 0.0, %v1922_v45  ;;  %v404_v25 = vmul.f32 1.442695, %v401_v61 }
 0x2bc   :  { %v1897_v18 = vmul.f32 %v408_v14, %v1838_v15  ;;  %v347_v19 = vpop.permute.xlu0 %346 }
 0x2bd   :  { %v669_v21 = vrot.slane %v667_v10, 6  ;;  %v841_v22 = vmul.f32 %v1872_v55, %v839_v13  ;;  %v1902_v23 = vmul.f32 %v347_v19, %v1838_v15  ;;  %v1657_v19 = vmov 85  }
 0x2be   :  { %v417_v24 = vadd.f32 %v416_v47, %v1897_v18  ;;  %v1656_v47 = vmov 86  }
 0x2bf   :  { %v671_v29 = vmul.f32 %v1852_v27, %v669_v21  ;;  %v842_v31 = vadd.f32 %v841_v22, %v1879_v60  ;;  %v1914_v34 = vpop.permute.xlu2 %947  ;;  %v357_v40 = vadd.f32 %v356_v32, %v1902_v23  ;;  %v762_v27 = vmul.f32 1.442695, %v760_v28 }
 0x2c0   :  { %v419_v36 = vrot.slane %v417_v24, 6  ;;  %v1303_v21 = vsub.f32 0.0, %v1763_v42 }
 0x2c1   :  { %v1917_v38 = vadd.f32 %v671_v29, %v1859_v35  ;;  %v844_v39 = vrot.slane %v842_v31, 6  ;;  %v462_v35 = vmul.f32 1.442695, %v460_v26  ;;  %1496 = vpow2.f32 %v762_v27 }
 0x2c2   :  { %v421_v41 = vmul.f32 %v1884_v0, %v419_v36  ;;  %1440 = vset.pattern.permute.xlu2 %v1655_v43  ;;  %1439 = vset.pattern.permute.xlu1 %v1648_v52  ;;  %v359_v52 = vrot.slane %v357_v40, 6 }
 0x2c3   :  { %v846_v48 = vmul.f32 %v1872_v55, %v844_v39  ;;  %634 = vperm.xlu2 %1440, %v1796_v53   ;;  %1191 = vperm.xlu1 %1439, %v1796_v53   ;;  %1498 = vpow2.f32 %v462_v35  ;;  %v1304_v39 = vmul.f32 1.442695, %v1303_v21 }
 0x2c4   :  { %v422_v50 = vadd.f32 %v421_v41, %v1897_v18  ;;  %v361_v5 = vmul.f32 %v1894_v17, %v359_v52  ;;  %1500 = vpow2.f32 %v404_v25 }
 0x2c5   :  { %v847_v54 = vadd.f32 %v846_v48, %v1879_v60  ;;  %v588_v56 = vpop.permute.xlu1 %587  ;;  %v468_v49 = vpop.permute.xlu0 %467  ;;  %1502 = vpow2.f32 %v1304_v39 }
 0x2c6   :  { %v424_v44 = vrot.slane %v422_v50, 6  ;;  %v1934_v57 = vmul.f32 %v588_v56, %v1838_v15  ;;  %v1962_v31 = vmul.f32 %v468_v49, %v1838_v15  ;;  %v699_v49 = vperm.slane %v1806_v63, 6 }
 0x2c7   :  { %v849_v59 = vrot.slane %v847_v54, 6  ;;  %v1950_v20 = vpop.eup %1496 }
 0x2c8   :  { %v426_v12 = vmul.f32 %v1884_v0, %v424_v44  ;;  %v597_v1 = vadd.f32 %v596_v58, %v1934_v57  ;;  %v776_v36 = vmul.f32 0.0, %v1950_v20  ;;  %v1658_v44 = vmov 88  }
 0x2c9   :  { %v851_v4 = vmul.f32 %v1872_v55, %v849_v59  ;;  %v1944_v6 = vpop.permute.xlu2 %1127  ;;  %v1956_v24 = vpop.eup %1498  ;;  %v1979_v58 = vmul.f32 %v1930_v51, %v1778_v33 }
 0x2ca   :  { %v427_v10 = vadd.f32 %v426_v12, %v1897_v18  ;;  %v599_v13 = vrot.slane %v597_v1, 6  ;;  %v1981_v59 = vpop.eup %1500 }
 0x2cb   :  { %v1948_v14 = vadd.f32 %v851_v4, %v1879_v60  ;;  %1443 = vset.pattern.permute.xlu2 %v1656_v47  ;;  %1442 = vset.pattern.permute.xlu1 %v1657_v19  ;;  %v362_v60 = vadd.f32 %v361_v5, %v1902_v23  ;;  %v700_v19 = vmul.f32 %v699_v49, %v1811_v3 }
 0x2cc   :  { %v429_v55 = vrot.slane %v427_v10, 6  ;;  %v601_v22 = vmul.f32 %v1922_v45, %v599_v13  ;;  %754 = vperm.xlu2 %1443, %v1796_v53   ;;  %694 = vperm.xlu1 %1442, %v1796_v53  }
 0x2cd   :  { %v364_v43 = vrot.slane %v362_v60, 6  ;;  %v702_v39 = vmul.f32 1.442695, %v700_v19 }
 0x2ce   :  { %v431_v26 = vmul.f32 %v1884_v0, %v429_v55  ;;  %v602_v28 = vadd.f32 %v601_v22, %v1934_v57  ;;  %v768_v29 = vpop.permute.xlu1 %767  ;;  %v476_v0 = vmul.f32 0.0, %v1956_v24 }
 0x2cf   :  { %v1965_v32 = vmul.f32 %v768_v29, %v1838_v15  ;;  %v1968_v37 = vpop.permute.xlu0 %707  ;;  %v366_v61 = vmul.f32 %v1894_v17, %v364_v43  ;;  %v1503_v29 = vpop.eup %1502  ;;  %1504 = vpow2.f32 %v702_v39 }
 0x2d0   :  { %v432_v40 = vadd.f32 %v431_v26, %v1897_v18  ;;  %v604_v41 = vrot.slane %v602_v28, 6  ;;  %v477_v50 = vadd.f32 %v476_v0, %v1962_v31  ;;  %v1659_v18 = vmov 87  }
 0x2d1   :  { %v777_v27 = vadd.f32 %v776_v36, %v1965_v32  ;;  %v367_v22 = vadd.f32 %v366_v61, %v1902_v23  ;;  %v521_v61 = vmul.f32 %v519_v2, %v1930_v51 }
 0x2d2   :  { %v434_v48 = vrot.slane %v432_v40, 6  ;;  %v606_v35 = vmul.f32 %v1922_v45, %v604_v41  ;;  %v479_v10 = vrot.slane %v477_v50, 6 }
 0x2d3   :  { %v779_v54 = vrot.slane %v777_v27, 6  ;;  %v412_v52 = vpop.permute.xlu2 %411  ;;  %v369_v0 = vrot.slane %v367_v22, 6  ;;  %v879_v27 = vperm.slane %v1828_v11, 1 }
 0x2d4   :  { %v607_v56 = vadd.f32 %v606_v35, %v1934_v57  ;;  %1445 = vset.pattern.permute.xlu2 %v1658_v44  ;;  %1444 = vset.pattern.permute.xlu1 %v1659_v18  ;;  %v1988_v4 = vmul.f32 %v412_v52, %v1979_v58  ;;  %v436_v5 = vmul.f32 %v1981_v59, %v434_v48  ;;  %v1660_v48 = vmov 91  }
 0x2d5   :  { %v781_v12 = vmul.f32 %v1950_v20, %v779_v54  ;;  %874 = vperm.xlu2 %1445, %v1796_v53   ;;  %814 = vperm.xlu1 %1444, %v1796_v53   ;;  %v1306_v35 = vadd.f32 1.0, %v1503_v29  ;;  %v339_v54 = vmul.f32 %v337_v30, %v1930_v51  ;;  %v1662_v44 = vmov 95  }
 0x2d6   :  { %v609_v1 = vrot.slane %v607_v56, 6  ;;  %v437_v25 = vadd.f32 %v436_v5, %v1988_v4  ;;  %1453 = vset.pattern.permute.xlu0 %v1662_v44  ;;  %v880_v30 = vmul.f32 %v879_v27, %v1811_v3 }
 0x2d7   :  { %v782_v13 = vadd.f32 %v781_v12, %v1965_v32  ;;  %v371_v12 = vmul.f32 %v1894_v17, %v369_v0  ;;  %1506 = vrcp.f32 %v1306_v35  ;;  %v342_v19 = vmul.f32 1.442695, %v339_v54 }
 0x2d8   :  { %v611_v47 = vmul.f32 %v1922_v45, %v609_v1  ;;  %v1997_v21 = vpop.permute.xlu1 %887  ;;  %v1999_v55 = vpop.permute.xlu0 %1007  ;;  %v439_v28 = vrot.slane %v437_v25, 6  ;;  %v481_v45 = vmul.f32 %v1956_v24, %v479_v10  ;;  %v939_v10 = vperm.slane %v1828_v11, 2 }
 0x2d9   :  { %v784_v60 = vrot.slane %v782_v13, 6  ;;  %v372_v22 = vadd.f32 %v371_v12, %v1902_v23  ;;  %1508 = vpow2.f32 %v342_v19  ;;  %v2048_v23 = vmul.f32 %v1968_v37, %v1838_v15 }
 0x2da   :  { %v2003_v26 = vadd.f32 %v611_v47, %v1934_v57  ;;  %v441_v40 = vmul.f32 %v1981_v59, %v439_v28  ;;  %v1661_v57 = vmov 90   ;;  %v482_v52 = vadd.f32 %v481_v45, %v1962_v31  ;;  %v2040_v45 = vpop.eup %1504 }
 0x2db   :  { %v786_v36 = vmul.f32 %v1950_v20, %v784_v60  ;;  %v882_v60 = vmul.f32 1.442695, %v880_v30  ;;  %v999_v28 = vperm.slane %v1828_v11, 3  ;;  %v374_v35 = vrot.slane %v372_v22, 6 }
 0x2dc   :  { %v2008_v41 = vpop.permute.xlu2 %454  ;;  %v442_v50 = vadd.f32 %v441_v40, %v1988_v4  ;;  %v484_v25 = vrot.slane %v482_v52, 6  ;;  %v1663_v40 = vmov 93  }
 0x2dd   :  { %v787_v43 = vadd.f32 %v786_v36, %v1965_v32  ;;  %1448 = vset.pattern.permute.xlu2 %v1660_v48  ;;  %1447 = vset.pattern.permute.xlu1 %v1661_v57  ;;  %v940_v36 = vmul.f32 %v939_v10, %v1811_v3  ;;  %v1119_v48 = vperm.slane %v1828_v11, 5  ;;  %v1000_v54 = vmul.f32 %v999_v28, %v1811_v3 }
 0x2de   :  { %1054 = vperm.xlu2 %1448, %v1796_v53   ;;  %994 = vperm.xlu1 %1447, %v1796_v53   ;;  %v444_v18 = vrot.slane %v442_v50, 6  ;;  %v486_v0 = vmul.f32 %v1956_v24, %v484_v25  ;;  %v716_v50 = vmul.f32 0.0, %v2040_v45 }
 0x2df   :  { %v789_v56 = vrot.slane %v787_v43, 6  ;;  %v1507_v43 = vpop.eup %1506  ;;  %v942_v37 = vmul.f32 1.442695, %v940_v36  ;;  %v1002_v25 = vmul.f32 1.442695, %v1000_v54 }
 0x2e0   :  { %v446_v13 = vmul.f32 %v1981_v59, %v444_v18  ;;  %v554_v18 = vrot.slane %v1882_v62, 6  ;;  %v1308_v30 = vmul.f32 %v1507_v43, %v1763_v42  ;;  %v2516_v42 = vperm.slane %v1828_v11, 7 }
 0x2e1   :  { %v791_v1 = vmul.f32 %v1950_v20, %v789_v56  ;;  %v2028_v5 = vpop.permute.xlu1 %1067  ;;  %v524_v20 = vmul.f32 1.442695, %v521_v61  ;;  %v487_v61 = vadd.f32 %v486_v0, %v1962_v31  ;;  %v2093_v0 = vmul.f32 %v1997_v21, %v1838_v15 }
 0x2e2   :  { %v2032_v47 = vpop.permute.xlu0 %1247  ;;  %v447_v17 = vadd.f32 %v446_v13, %v1988_v4  ;;  %v1120_v13 = vmul.f32 %v1119_v48, %v1811_v3  ;;  %v2517_v43 = vperm.slane %v1828_v11, 6  ;;  %v1240_v21 = vmul.f32 %v2516_v42, %v1811_v3 }
 0x2e3   :  { %v2035_v2 = vadd.f32 %v791_v1, %v1965_v32  ;;  %v1664_v32 = vmov 92   ;;  %1510 = vpow2.f32 %v524_v20  ;;  %v2064_v1 = vpop.eup %1508 }
 0x2e4   :  { %v449_v39 = vrot.slane %v447_v17, 6  ;;  %1512 = vpow2.f32 %v882_v60  ;;  %v376_v20 = vmul.f32 %v2064_v1, %v374_v35 }
 0x2e5   :  { %v532_v29 = vpop.permute.xlu2 %531  ;;  %1514 = vpow2.f32 %v942_v37 }
 0x2e6   :  { %1450 = vset.pattern.permute.xlu2 %v1663_v40  ;;  %1449 = vset.pattern.permute.xlu1 %v1664_v32  ;;  %v451_v57 = vmul.f32 %v1981_v59, %v449_v39  ;;  %v717_v59 = vadd.f32 %v716_v50, %v2048_v23  ;;  %v2075_v62 = vmul.f32 %v532_v29, %v1979_v58  ;;  %v1122_v32 = vmul.f32 1.442695, %v1120_v13 }
 0x2e7   :  { %1174 = vperm.xlu2 %1450, %v1796_v53   ;;  %1114 = vperm.xlu1 %1449, %v1796_v53   ;;  %1516 = vpow2.f32 %v1002_v25  ;;  %v1180_v13 = vmul.f32 %v2517_v43, %v1811_v3  ;;  %v2122_v25 = vmul.f32 %v1914_v34, %v1838_v15  ;;  %v761_v34 = vmul.f32 %v759_v9, %v1930_v51 }
 0x2e8   :  { %v452_v52 = vadd.f32 %v451_v57, %v1988_v4  ;;  %v1059_v4 = vperm.slane %v1828_v11, 4  ;;  %v719_v36 = vrot.slane %v717_v59, 6  ;;  %v461_v57 = vmul.f32 %v459_v8, %v1930_v51 }
 0x2e9   :  { %v2081_v22 = vpop.eup %1510  ;;  %1518 = vpow2.f32 %v1122_v32 }
 0x2ea   :  { %v2059_v56 = vpop.permute.xlu1 %1187  ;;  %v2071_v19 = vmul.f32 %v2008_v41, %v452_v52  ;;  %v2084_v60 = vpop.eup %1512  ;;  %v489_v41 = vrot.slane %v487_v61, 6  ;;  %v556_v39 = vmul.f32 %v2081_v22, %v554_v18  ;;  %v721_v37 = vmul.f32 %v2040_v45, %v719_v36 }
 0x2eb   :  { %v352_v12 = vpop.permute.xlu0 %351  ;;  %v896_v54 = vmul.f32 0.0, %v2084_v60  ;;  %v2111_v52 = vpop.eup %1514  ;;  %v464_v59 = vmul.f32 1.442695, %v461_v57  ;;  %v821_v36 = vmul.f32 %v819_v16, %v1930_v51 }
 0x2ec   :  { %v2078_v17 = vmul.f32 %v352_v12, %v1979_v58  ;;  %v557_v35 = vadd.f32 %v556_v39, %v2075_v62  ;;  %v956_v57 = vmul.f32 0.0, %v2111_v52 }
 0x2ed   :  { %v897_v18 = vadd.f32 %v896_v54, %v2093_v0  ;;  %v2130_v39 = vpop.eup %1516  ;;  %1520 = vpow2.f32 %v464_v59  ;;  %v581_v54 = vmul.f32 %v579_v46, %v1930_v51  ;;  %v2160_v46 = vmul.f32 1.442695, %v761_v34 }
 0x2ee   :  { %v377_v40 = vadd.f32 %v376_v20, %v2078_v17  ;;  %v1242_v20 = vmul.f32 1.442695, %v1240_v21  ;;  %v957_v21 = vadd.f32 %v956_v57, %v2122_v25  ;;  %v2171_v57 = vmul.f32 %v1944_v6, %v1838_v15 }
 0x2ef   :  { %1310 = vrot.lane.b32.xlu2 %v1308_v30, %s1665_s2  ;;  %1452 = vset.pattern.permute.xlu1 %v1662_v44  ;;  %v2089_v29 = vpop.permute.xlu2 %651  ;;  %v1060_v44 = vmul.f32 %v1059_v4, %v1811_v3  ;;  %v559_v30 = vrot.slane %v557_v35, 6  ;;  %v722_v3 = vadd.f32 %v721_v37, %v2048_v23  ;;  %v2149_v9 = vpop.eup %1518  ;;  %v2155_v37 = vmul.f32 1.442695, %v821_v36 }
 0x2f0   :  { %1294 = vperm.xlu1 %1452, %v1796_v53   ;;  %v379_v50 = vrot.slane %v377_v40, 6  ;;  %v491_v53 = vmul.f32 %v1956_v24, %v489_v41  ;;  %v641_v41 = vmul.f32 %v639_v7, %v1930_v51  ;;  %v2140_v7 = vmul.f32 %v1999_v55, %v1838_v15 }
 0x2f1   :  { %v1062_v12 = vmul.f32 1.442695, %v1060_v44  ;;  %v899_v44 = vrot.slane %v897_v18, 6  ;;  %v561_v16 = vmul.f32 %v2081_v22, %v559_v30  ;;  %v724_v18 = vrot.slane %v722_v3, 6 }
 0x2f2   :  { %v381_v8 = vmul.f32 %v2064_v1, %v379_v50  ;;  %v492_v40 = vadd.f32 %v491_v53, %v1962_v31  ;;  %v1182_v31 = vmul.f32 1.442695, %v1180_v13  ;;  %v1016_v53 = vmul.f32 0.0, %v2130_v39 }
 0x2f3   :  { %v2153_v55 = vmul.f32 1.442695, %v641_v41  ;;  %1522 = vpow2.f32 %v1062_v12  ;;  %v901_v30 = vmul.f32 %v2084_v60, %v899_v44  ;;  %v1136_v41 = vmul.f32 0.0, %v2149_v9  ;;  %v2167_v3 = vpop.eup %1520 }
 0x2f4   :  { %v2114_v61 = vpop.permute.xlu1 %394  ;;  %v382_v24 = vadd.f32 %v381_v8, %v2078_v17  ;;  %v494_v8 = vrot.slane %v492_v40, 6  ;;  %v1017_v13 = vadd.f32 %v1016_v53, %v2140_v7  ;;  %v562_v36 = vadd.f32 %v561_v16, %v2075_v62 }
 0x2f5   :  { %v584_v40 = vmul.f32 1.442695, %v581_v54  ;;  %v959_v12 = vrot.slane %v957_v21, 6  ;;  %1524 = vpow2.f32 %v1182_v31  ;;  %v1061_v44 = vmul.f32 %v1059_v4, %v1930_v51  ;;  %v2243_v43 = vpop.permute.xlu0 %831 }
 0x2f6   :  { %v384_v32 = vrot.slane %v382_v24, 6  ;;  %v941_v24 = vmul.f32 %v939_v10, %v1930_v51  ;;  %v726_v10 = vmul.f32 %v2040_v45, %v724_v18  ;;  %v496_v54 = vmul.f32 %v2167_v3, %v494_v8 }
 0x2f7   :  { %v902_v21 = vadd.f32 %v901_v30, %v2093_v0  ;;  %v1019_v53 = vrot.slane %v1017_v13, 6  ;;  %1526 = vpow2.f32 %v1242_v20  ;;  %v2196_v30 = vmul.f32 1.442695, %v1061_v44 }
 0x2f8   :  { %v2142_v35 = vpop.permute.xlu2 %771  ;;  %v386_v50 = vmul.f32 %v2064_v1, %v384_v32  ;;  %v2183_v6 = vmul.f32 1.442695, %v941_v24  ;;  %1528 = vpow2.f32 %v584_v40  ;;  %v701_v20 = vmul.f32 %v699_v49, %v1930_v51 }
 0x2f9   :  { %v2185_v31 = vpop.eup %1522  ;;  %v1137_v13 = vadd.f32 %v1136_v41, %v2171_v57  ;;  %1530 = vpow2.f32 %v2153_v55 }
 0x2fa   :  { %v387_v59 = vadd.f32 %v386_v50, %v2078_v17  ;;  %v1076_v44 = vmul.f32 0.0, %v2185_v31 }
 0x2fb   :  { %v2204_v40 = vpop.eup %1524 }
 0x2fc   :  { %v389_v32 = vrot.slane %v387_v59, 6  ;;  %v564_v59 = vrot.slane %v562_v36, 6 }
 0x2fd   :  { %v2217_v41 = vpop.eup %1526 }
 0x2fe   :  { %v472_v34 = vpop.permute.xlu1 %471  ;;  %v391_v50 = vmul.f32 %v2064_v1, %v389_v32  ;;  %v961_v1 = vmul.f32 %v2111_v52, %v959_v12  ;;  %v2192_v32 = vmul.f32 %v2028_v5, %v1838_v15  ;;  %v614_v5 = vrot.slane %v2003_v26, 6 }
 0x2ff   :  { %v2179_v16 = vmul.f32 %v472_v34, %v1979_v58  ;;  %v904_v12 = vrot.slane %v902_v21, 6  ;;  %v1021_v34 = vmul.f32 %v2130_v39, %v1019_v53  ;;  %v566_v49 = vmul.f32 %v2081_v22, %v564_v59  ;;  %v2230_v21 = vpop.eup %1528 }
 0x300   :  { %v392_v4 = vadd.f32 %v391_v50, %v2078_v17  ;;  %v727_v17 = vadd.f32 %v726_v10, %v2048_v23  ;;  %v962_v26 = vadd.f32 %v961_v1, %v2122_v25  ;;  %v1077_v10 = vadd.f32 %v1076_v44, %v2192_v32 }
 0x301   :  { %v497_v18 = vadd.f32 %v496_v54, %v2179_v16  ;;  %v2223_v54 = vmul.f32 %v2059_v56, %v1838_v15  ;;  %v1139_v53 = vrot.slane %v1137_v13, 6  ;;  %v906_v1 = vmul.f32 %v2084_v60, %v904_v12 }
 0x302   :  { %v2194_v8 = vpop.permute.xlu2 %951  ;;  %v397_v24 = vmul.f32 %v2114_v61, %v392_v4  ;;  %v881_v61 = vmul.f32 %v879_v27, %v1930_v51  ;;  %v729_v59 = vrot.slane %v727_v17, 6  ;;  %v1196_v27 = vmul.f32 0.0, %v2204_v40 }
 0x303   :  { %v499_v36 = vrot.slane %v497_v18, 6  ;;  %v704_v44 = vmul.f32 1.442695, %v701_v20  ;;  %v567_v13 = vadd.f32 %v566_v49, %v2075_v62  ;;  %v964_v17 = vrot.slane %v962_v26, 6 }
 0x304   :  { %v2210_v50 = vadd.f32 %v2071_v19, %v397_v24  ;;  %v2228_v19 = vmul.f32 %v999_v28, %v1930_v51  ;;  %v1022_v24 = vadd.f32 %v1021_v34, %v2140_v7  ;;  %v1079_v42 = vrot.slane %v1077_v10, 6 }
 0x305   :  { %v501_v63 = vmul.f32 %v2167_v3, %v499_v36  ;;  %v616_v36 = vmul.f32 %v2230_v21, %v614_v5  ;;  %v731_v34 = vmul.f32 %v2040_v45, %v729_v59  ;;  %v2257_v20 = vmul.f32 %v1119_v48, %v1930_v51 }
 0x306   :  { %v1141_v49 = vmul.f32 %v2149_v9, %v1139_v53  ;;  %v907_v26 = vadd.f32 %v906_v1, %v2093_v0  ;;  %v1024_v10 = vrot.slane %v1022_v24, 6  ;;  %v1256_v45 = vmul.f32 0.0, %v2217_v41 }
 0x307   :  { %v502_v4 = vadd.f32 %v501_v63, %v2179_v16  ;;  %v592_v18 = vpop.permute.xlu1 %591  ;;  %v1197_v63 = vadd.f32 %v1196_v27, %v2223_v54  ;;  %1532 = vpow2.f32 %v704_v44  ;;  %v966_v59 = vmul.f32 %v2111_v52, %v964_v17 }
 0x308   :  { %v2237_v56 = vmul.f32 %v592_v18, %v1979_v58  ;;  %v2249_v18 = vmul.f32 %v2032_v47, %v1838_v15  ;;  %v569_v47 = vrot.slane %v567_v13, 6  ;;  %v674_v53 = vrot.slane %v1917_v38, 6 }
 0x309   :  { %v504_v28 = vrot.slane %v502_v4, 6  ;;  %v1081_v4 = vmul.f32 %v2185_v31, %v1079_v42  ;;  %v732_v1 = vadd.f32 %v731_v34, %v2048_v23  ;;  %v909_v44 = vrot.slane %v907_v26, 6 }
 0x30a   :  { %v617_v12 = vadd.f32 %v616_v36, %v2237_v56  ;;  %v1199_v36 = vrot.slane %v1197_v63, 6  ;;  %v1257_v24 = vadd.f32 %v1256_v45, %v2249_v18  ;;  %v1026_v13 = vmul.f32 %v2130_v39, %v1024_v10 }
 0x30b   :  { %v506_v55 = vmul.f32 %v2167_v3, %v504_v28  ;;  %v2252_v5 = vpop.permute.xlu2 %1071  ;;  %v2266_v28 = vpop.eup %1530  ;;  %1534 = vpow2.f32 %v2155_v37  ;;  %v884_v38 = vmul.f32 1.442695, %v881_v61  ;;  %v967_v23 = vadd.f32 %v966_v59, %v2122_v25 }
 0x30c   :  { %v619_v27 = vrot.slane %v617_v12, 6  ;;  %v1082_v34 = vadd.f32 %v1081_v4, %v2192_v32  ;;  %v1201_v45 = vmul.f32 %v2204_v40, %v1199_v36  ;;  %v734_v10 = vrot.slane %v732_v1, 6  ;;  %v515_v61 = vpop.permute.xlu0 %514 }
 0x30d   :  { %v507_v15 = vadd.f32 %v506_v55, %v2179_v16  ;;  %v1142_v55 = vadd.f32 %v1141_v49, %v2171_v57  ;;  %v2280_v26 = vpop.eup %1532  ;;  %v2289_v4 = vmul.f32 %v2089_v29, %v1979_v58  ;;  %1536 = vpow2.f32 %v2160_v46 }
 0x30e   :  { %v621_v48 = vmul.f32 %v2230_v21, %v619_v27  ;;  %v571_v27 = vmul.f32 %v2081_v22, %v569_v47  ;;  %v1027_v22 = vadd.f32 %v1026_v13, %v2140_v7  ;;  %v736_v29 = vmul.f32 %v2280_v26, %v734_v10 }
 0x30f   :  { %v509_v12 = vrot.slane %v507_v15, 6  ;;  %v1259_v15 = vrot.slane %v1257_v24, 6  ;;  %v1084_v24 = vrot.slane %v1082_v34, 6  ;;  %1538 = vpow2.f32 %v2183_v6 }
 0x310   :  { %v622_v17 = vadd.f32 %v621_v48, %v2237_v56  ;;  %v676_v48 = vmul.f32 %v2266_v28, %v674_v53  ;;  %v572_v53 = vadd.f32 %v571_v27, %v2075_v62  ;;  %1540 = vpow2.f32 %v884_v38 }
 0x311   :  { %v511_v42 = vmul.f32 %v2167_v3, %v509_v12  ;;  %v712_v63 = vpop.permute.xlu1 %711  ;;  %v1144_v3 = vrot.slane %v1142_v55, 6  ;;  %v911_v12 = vmul.f32 %v2084_v60, %v909_v44  ;;  %v1202_v60 = vadd.f32 %v1201_v45, %v2223_v54  ;;  %v2297_v44 = vpop.eup %1534 }
 0x312   :  { %v624_v49 = vrot.slane %v622_v17, 6  ;;  %v2292_v1 = vmul.f32 %v712_v63, %v1979_v58  ;;  %v1261_v13 = vmul.f32 %v2217_v41, %v1259_v15  ;;  %v1086_v15 = vmul.f32 %v2185_v31, %v1084_v24 }
 0x313   :  { %v512_v37 = vadd.f32 %v511_v42, %v2179_v16  ;;  %v969_v16 = vrot.slane %v967_v23, 6  ;;  %v1146_v63 = vmul.f32 %v2149_v9, %v1144_v3  ;;  %v912_v27 = vadd.f32 %v911_v12, %v2093_v0 }
 0x314   :  { %v575_v47 = vpop.permute.xlu2 %574  ;;  %v626_v59 = vmul.f32 %v2230_v21, %v624_v49  ;;  %v1029_v49 = vrot.slane %v1027_v22, 6  ;;  %v677_v23 = vadd.f32 %v676_v48, %v2289_v4  ;;  %v737_v34 = vadd.f32 %v736_v29, %v2292_v1 }
 0x315   :  { %v517_v36 = vmul.f32 %v515_v61, %v512_v37  ;;  %v577_v42 = vmul.f32 %v575_v47, %v572_v53  ;;  %v1204_v37 = vrot.slane %v1202_v60, 6  ;;  %v971_v3 = vmul.f32 %v2111_v52, %v969_v16  ;;  %v2318_v52 = vpop.eup %1536 }
 0x316   :  { %v627_v55 = vadd.f32 %v626_v59, %v2237_v56  ;;  %v1262_v46 = vadd.f32 %v1261_v13, %v2249_v18  ;;  %v1004_v0 = vmul.f32 1.442695, %v2228_v19  ;;  %v854_v48 = vrot.slane %v1948_v14, 6  ;;  %v2331_v16 = vpop.eup %1538 }
 0x317   :  { %v518_v17 = vadd.f32 %v517_v36, %v2210_v50  ;;  %v1147_v12 = vadd.f32 %v1146_v63, %v2171_v57  ;;  %v794_v22 = vrot.slane %v2035_v2, 6  ;;  %v914_v47 = vrot.slane %v912_v27, 6  ;;  %v2340_v13 = vpop.eup %1540 }
 0x318   :  { %v629_v62 = vrot.slane %v627_v55, 6  ;;  %v1031_v6 = vmul.f32 %v2130_v39, %v1029_v49  ;;  %v679_v59 = vrot.slane %v677_v23, 6  ;;  %v1087_v38 = vadd.f32 %v1086_v15, %v2192_v32 }
 0x319   :  { %v578_v45 = vadd.f32 %v577_v42, %v518_v17  ;;  %v1206_v19 = vmul.f32 %v2204_v40, %v1204_v37  ;;  %v2324_v14 = vmul.f32 %v2142_v35, %v1979_v58  ;;  %v972_v2 = vadd.f32 %v971_v3, %v2122_v25 }
 0x31a   :  { %v892_v50 = vpop.permute.xlu1 %891  ;;  %v631_v10 = vmul.f32 %v2230_v21, %v629_v62  ;;  %v739_v21 = vrot.slane %v737_v34, 6  ;;  %v2329_v39 = vmul.f32 %v2243_v43, %v1979_v58  ;;  %1542 = vpow2.f32 %v1004_v0 }
 0x31b   :  { %v856_v24 = vmul.f32 %v2297_v44, %v854_v48  ;;  %v796_v60 = vmul.f32 %v2318_v52, %v794_v22  ;;  %v2336_v55 = vmul.f32 %v892_v50, %v1979_v58  ;;  %v1149_v25 = vrot.slane %v1147_v12, 6 }
 0x31c   :  { %v632_v61 = vadd.f32 %v631_v10, %v2237_v56  ;;  %v1264_v56 = vrot.slane %v1262_v46, 6  ;;  %v1032_v17 = vadd.f32 %v1031_v6, %v2140_v7  ;;  %v681_v43 = vmul.f32 %v2266_v28, %v679_v59 }
 0x31d   :  { %v635_v36 = vpop.permute.xlu2 %634  ;;  %v741_v29 = vmul.f32 %v2280_v26, %v739_v21  ;;  %v1089_v42 = vrot.slane %v1087_v38, 6  ;;  %v1207_v63 = vadd.f32 %v1206_v19, %v2223_v54  ;;  %v797_v49 = vadd.f32 %v796_v60, %v2324_v14 }
 0x31e   :  { %v637_v53 = vmul.f32 %v635_v36, %v632_v61  ;;  %v916_v62 = vmul.f32 %v2340_v13, %v914_v47  ;;  %v1266_v27 = vmul.f32 %v2217_v41, %v1264_v56  ;;  %v857_v23 = vadd.f32 %v856_v24, %v2329_v39 }
 0x31f   :  { %1544 = vpow2.f32 %v2196_v30  ;;  %v2518_v15 = vperm.slane %v1828_v11, 6  ;;  %v974_v10 = vrot.slane %v972_v2, 6  ;;  %v1034_v3 = vrot.slane %v1032_v17, 6 }
 0x320   :  { %v2338_v35 = vadd.f32 %v637_v53, %v578_v45  ;;  %v917_v7 = vadd.f32 %v916_v62, %v2336_v55  ;;  %v1124_v45 = vmul.f32 1.442695, %v2257_v20  ;;  %v2356_v50 = vpop.eup %1542  ;;  %v682_v46 = vadd.f32 %v681_v43, %v2289_v4 }
 0x321   :  { %v1181_v37 = vmul.f32 %v2518_v15, %v1930_v51  ;;  %v742_v0 = vadd.f32 %v741_v29, %v2292_v1  ;;  %v1151_v48 = vmul.f32 %v2149_v9, %v1149_v25  ;;  %v1091_v30 = vmul.f32 %v2185_v31, %v1089_v42 }
 0x322   :  { %v1209_v12 = vrot.slane %v1207_v63, 6  ;;  %v799_v22 = vrot.slane %v797_v49, 6  ;;  %v1267_v20 = vadd.f32 %v1266_v27, %v2249_v18  ;;  %v859_v61 = vrot.slane %v857_v23, 6 }
 0x323   :  { %v1012_v34 = vpop.permute.xlu1 %1011  ;;  %v2365_v47 = vmul.f32 %v2194_v8, %v1979_v58  ;;  %v919_v59 = vrot.slane %v917_v7, 6  ;;  %1546 = vpow2.f32 %v1124_v45  ;;  %v1184_v21 = vmul.f32 1.442695, %v1181_v37 }
 0x324   :  { %v2368_v6 = vmul.f32 %v1012_v34, %v1979_v58  ;;  %v684_v36 = vrot.slane %v682_v46, 6  ;;  %v976_v9 = vmul.f32 %v2331_v16, %v974_v10  ;;  %v744_v38 = vrot.slane %v742_v0, 6 }
 0x325   :  { %v1036_v31 = vmul.f32 %v2356_v50, %v1034_v3  ;;  %v2372_v19 = vpop.eup %1544  ;;  %v1152_v53 = vadd.f32 %v1151_v48, %v2171_v57  ;;  %v1092_v2 = vadd.f32 %v1091_v30, %v2192_v32  ;;  %v1211_v8 = vmul.f32 %v2204_v40, %v1209_v12 }
 0x326   :  { %v801_v56 = vmul.f32 %v2318_v52, %v799_v22  ;;  %v1269_v24 = vrot.slane %v1267_v20, 6  ;;  %v861_v60 = vmul.f32 %v2297_v44, %v859_v61  ;;  %v977_v25 = vadd.f32 %v976_v9, %v2365_v47 }
 0x327   :  { %v1037_v17 = vadd.f32 %v1036_v31, %v2368_v6  ;;  %v2519_v43 = vperm.slane %v1828_v11, 7  ;;  %v921_v42 = vmul.f32 %v2340_v13, %v919_v59  ;;  %v746_v32 = vmul.f32 %v2280_v26, %v744_v38  ;;  %v1252_v31 = vpop.permute.xlu0 %1251 }
 0x328   :  { %1548 = vpow2.f32 %v1184_v21  ;;  %v686_v40 = vmul.f32 %v2266_v28, %v684_v36  ;;  %v1154_v49 = vrot.slane %v1152_v53, 6  ;;  %v1094_v62 = vrot.slane %v1092_v2, 6 }
 0x329   :  { %v1241_v29 = vmul.f32 %v2519_v43, %v1930_v51  ;;  %v2387_v63 = vpop.eup %1546  ;;  %v1212_v27 = vadd.f32 %v1211_v8, %v2223_v54  ;;  %v802_v23 = vadd.f32 %v801_v56, %v2324_v14  ;;  %v1271_v34 = vmul.f32 %v2217_v41, %v1269_v24 }
 0x32a   :  { %v862_v11 = vadd.f32 %v861_v60, %v2329_v39  ;;  %v979_v51 = vrot.slane %v977_v25, 6  ;;  %v1039_v7 = vrot.slane %v1037_v17, 6  ;;  %v2395_v15 = vmul.f32 %v2252_v5, %v1979_v58 }
 0x32b   :  { %v1244_v45 = vmul.f32 1.442695, %v1241_v29  ;;  %v922_v37 = vadd.f32 %v921_v42, %v2336_v55  ;;  %v747_v54 = vadd.f32 %v746_v32, %v2292_v1  ;;  %v687_v3 = vadd.f32 %v686_v40, %v2289_v4 }
 0x32c   :  { %v1132_v57 = vpop.permute.xlu1 %1131  ;;  %v1214_v46 = vrot.slane %v1212_v27, 6  ;;  %v804_v41 = vrot.slane %v802_v23, 6  ;;  %v1096_v0 = vmul.f32 %v2372_v19, %v1094_v62  ;;  %v1156_v48 = vmul.f32 %v2387_v63, %v1154_v49 }
 0x32d   :  { %v2399_v10 = vmul.f32 %v1132_v57, %v1979_v58  ;;  %v1272_v5 = vadd.f32 %v1271_v34, %v2249_v18  ;;  %v864_v12 = vrot.slane %v862_v11, 6  ;;  %v981_v22 = vmul.f32 %v2331_v16, %v979_v51  ;;  %v755_v11 = vpop.permute.xlu2 %754 }
 0x32e   :  { %v2405_v30 = vpop.eup %1548  ;;  %v1041_v20 = vmul.f32 %v2356_v50, %v1039_v7  ;;  %1550 = vpow2.f32 %v1244_v45  ;;  %v1097_v61 = vadd.f32 %v1096_v0, %v2395_v15  ;;  %v924_v59 = vrot.slane %v922_v37, 6  ;;  %v1324_v0 = vld [vmem:[%s2514_s6 + $0x30] sm:$0xff] }
 0x32f   :  { %v1157_v21 = vadd.f32 %v1156_v48, %v2399_v10  ;;  %v749_v36 = vrot.slane %v747_v54, 6  ;;  %v689_v38 = vrot.slane %v687_v3, 6  ;;  %v1216_v18 = vmul.f32 %v2405_v30, %v1214_v46 }
 0x330   :  { %v806_v2 = vmul.f32 %v2318_v52, %v804_v41  ;;  %v1274_v8 = vrot.slane %v1272_v5, 6  ;;  %v982_v56 = vadd.f32 %v981_v22, %v2365_v47  ;;  %v1042_v24 = vadd.f32 %v1041_v20, %v2368_v6  ;;  %v1325_v41 = vld [vmem:[%s2514_s6 + $0x38] sm:$0xff] }
 0x331   :  { %v866_v60 = vmul.f32 %v2297_v44, %v864_v12  ;;  %v1099_v25 = vrot.slane %v1097_v61, 6  ;;  %v926_v17 = vmul.f32 %v2340_v13, %v924_v59  ;;  %v1159_v43 = vrot.slane %v1157_v21, 6  ;;  %1339 = vmatpush.msrb.mxu0 %v1325_v41  ;;  %v1323_v61 = vld [vmem:[%s2514_s6 + $0x28] sm:$0xff] }
 0x332   :  { %v2423_v42 = vmul.f32 %v1252_v31, %v1979_v58  ;;  %v751_v57 = vmul.f32 %v2280_v26, %v749_v36  ;;  %v691_v32 = vmul.f32 %v2266_v28, %v689_v38  ;;  %v807_v62 = vadd.f32 %v806_v2, %v2324_v14 }
 0x333   :  { %v984_v27 = vrot.slane %v982_v56, 6  ;;  %v1044_v34 = vrot.slane %v1042_v24, 6  ;;  %v867_v51 = vadd.f32 %v866_v60, %v2329_v39  ;;  %v1101_v7 = vmul.f32 %v2372_v19, %v1099_v25  ;;  %1340 = vmatpush.msrb.mxu0 %v1324_v0 }
 0x334   :  { %v2427_v40 = vpop.eup %1550  ;;  %v1161_v26 = vmul.f32 %v2387_v63, %v1159_v43  ;;  %v752_v45 = vadd.f32 %v751_v57, %v2292_v1  ;;  %v692_v37 = vadd.f32 %v691_v32, %v2289_v4  ;;  %v809_v46 = vrot.slane %v807_v62, 6  ;;  %v1322_v32 = vld [vmem:[%s2514_s6 + $0x20] sm:$0xff] }
 0x335   :  { %v1192_v9 = vpop.permute.xlu1 %1191  ;;  %v1276_v23 = vmul.f32 %v2427_v40, %v1274_v8  ;;  %v869_v48 = vrot.slane %v867_v51, 6  ;;  %v1046_v5 = vmul.f32 %v2356_v50, %v1044_v34  ;;  %v986_v1 = vmul.f32 %v2331_v16, %v984_v27  ;;  %1341 = vmatpush.msrb.mxu0 %v1323_v61 }
 0x336   :  { %v2413_v53 = vmul.f32 %v1192_v9, %v1979_v58  ;;  %v927_v58 = vadd.f32 %v926_v17, %v2336_v55  ;;  %v1102_v4 = vadd.f32 %v1101_v7, %v2395_v15  ;;  %v1162_v20 = vadd.f32 %v1161_v26, %v2399_v10  ;;  %v935_v7 = vpop.permute.xlu0 %934 }
 0x337   :  { %v1277_v28 = vadd.f32 %v1276_v23, %v2423_v42  ;;  %v757_v21 = vmul.f32 %v755_v11, %v752_v45  ;;  %v811_v38 = vmul.f32 %v2318_v52, %v809_v46  ;;  %v871_v31 = vmul.f32 %v2297_v44, %v869_v48  ;;  %1342 = vmatpush.msrb.mxu0 %v1322_v32  ;;  %v1320_v23 = vld [vmem:[%s2514_s6 + $0x10] sm:$0xff]  ;;  %v1318_v46 = vld [vmem:[%s2514_s6] sm:$0xff] }
 0x338   :  { %v1217_v29 = vadd.f32 %v1216_v18, %v2413_v53  ;;  %v929_v22 = vrot.slane %v927_v58, 6  ;;  %v1047_v18 = vadd.f32 %v1046_v5, %v2368_v6  ;;  %v987_v8 = vadd.f32 %v986_v1, %v2365_v47 }
 0x339   :  { %v1279_v59 = vrot.slane %v1277_v28, 6  ;;  %v1104_v56 = vrot.slane %v1102_v4, 6  ;;  %v1164_v24 = vrot.slane %v1162_v20, 6  ;;  %v812_v43 = vadd.f32 %v811_v38, %v2324_v14 }
 0x33a   :  { %v1219_v49 = vrot.slane %v1217_v29, 6  ;;  %v931_v60 = vmul.f32 %v2340_v13, %v929_v22  ;;  %v872_v52 = vadd.f32 %v871_v31, %v2329_v39  ;;  %v1049_v29 = vrot.slane %v1047_v18, 6 }
 0x33b   :  { %v1281_v25 = vmul.f32 %v2427_v40, %v1279_v59  ;;  %v989_v57 = vrot.slane %v987_v8, 6  ;;  %v1166_v13 = vmul.f32 %v2387_v63, %v1164_v24  ;;  %v1106_v14 = vmul.f32 %v2372_v19, %v1104_v56 }
 0x33c   :  { %v1221_v54 = vmul.f32 %v2405_v30, %v1219_v49  ;;  %v1321_v49 = vld [vmem:[%s2514_s6 + $0x18] sm:$0xff]  ;;  %v932_v27 = vadd.f32 %v931_v60, %v2336_v55  ;;  %v1051_v58 = vmul.f32 %v2356_v50, %v1049_v29  ;;  %v1319_v55 = vld [vmem:[%s2514_s6 + $0x8] sm:$0xff] }
 0x33d   :  { %v1282_v39 = vadd.f32 %v1281_v25, %v2423_v42  ;;  %1343 = vmatpush.msrb.mxu0 %v1321_v49  ;;  %v991_v26 = vmul.f32 %v2331_v16, %v989_v57  ;;  %v1167_v28 = vadd.f32 %v1166_v13, %v2399_v10 }
 0x33e   :  { %v695_v3 = vpop.permute.xlu1 %694  ;;  %v1222_v9 = vadd.f32 %v1221_v54, %v2413_v53  ;;  %v1107_v54 = vadd.f32 %v1106_v14, %v2395_v15  ;;  %v1052_v0 = vadd.f32 %v1051_v58, %v2368_v6 }
 0x33f   :  { %v697_v12 = vmul.f32 %v695_v3, %v692_v37  ;;  %v937_v37 = vmul.f32 %v935_v7, %v932_v27  ;;  %1344 = vmatpush.msrb.mxu0 %v1320_v23  ;;  %v1284_v3 = vrot.slane %v1282_v39, 6  ;;  %v992_v48 = vadd.f32 %v991_v26, %v2365_v47 }
 0x340   :  { %v1224_v17 = vrot.slane %v1222_v9, 6  ;;  %v1169_v5 = vrot.slane %v1167_v28, 6  ;;  %v1109_v1 = vrot.slane %v1107_v54, 6 }
 0x341   :  { %v698_v36 = vadd.f32 %v697_v12, %v2338_v35  ;;  %v875_v35 = vpop.permute.xlu2 %874  ;;  %1345 = vmatpush.msrb.mxu0 %v1319_v55  ;;  %v1286_v22 = vmul.f32 %v2427_v40, %v1284_v3 }
 0x342   :  { %v877_v34 = vmul.f32 %v875_v35, %v872_v52  ;;  %v1226_v11 = vmul.f32 %v2405_v30, %v1224_v17  ;;  %v1462_v52 = vld [vmem:[#allocation6 + $0x16] ss:$0 sm:$0xff] }
 0x343   :  { %v758_v2 = vadd.f32 %v757_v21, %v698_v36  ;;  %1346 = vmatpush.msrb.mxu0 %v1318_v46  ;;  %v1171_v21 = vmul.f32 %v2387_v63, %v1169_v5  ;;  %v1111_v36 = vmul.f32 %v2372_v19, %v1109_v1  ;;  %v1287_v38 = vadd.f32 %v1286_v22, %v2423_v42  ;;  %v1235_v63 = vpop.permute.xlu0 %1234 }
 0x344   :  { %v1227_v50 = vadd.f32 %v1226_v11, %v2413_v53 }
 0x345   :  { %v1172_v47 = vadd.f32 %v1171_v21, %v2399_v10  ;;  %v1112_v31 = vadd.f32 %v1111_v36, %v2395_v15  ;;  %v1289_v8 = vrot.slane %v1287_v38, 6  ;;  %v1301_v15 = vmul.f32 %v1462_v52, %v1778_v33 }
 0x346   :  { %v1229_v20 = vrot.slane %v1227_v50, 6 }
 0x347   :  { %v815_v44 = vpop.permute.xlu1 %814  ;;  %v1291_v19 = vmul.f32 %v2427_v40, %v1289_v8  ;;  %v1463_v40 = vld [vmem:[%s2514_s6 + $0x40] ss:$0 sm:$0xff] }
 0x348   :  { %v817_v62 = vmul.f32 %v815_v44, %v812_v43  ;;  %v1231_v6 = vmul.f32 %v2405_v30, %v1229_v20 }
 0x349   :  { %v1055_v16 = vpop.permute.xlu2 %1054  ;;  %v1292_v30 = vadd.f32 %v1291_v19, %v2423_v42 }
 0x34a   :  { %v818_v51 = vadd.f32 %v817_v62, %v758_v2  ;;  %v1057_v61 = vmul.f32 %v1055_v16, %v1052_v0  ;;  %v1232_v24 = vadd.f32 %v1231_v6, %v2413_v53 }
 0x34c   :  { %v878_v45 = vadd.f32 %v877_v34, %v818_v51  ;;  %v1237_v17 = vmul.f32 %v1235_v63, %v1232_v24 }
 0x34e   :  { %v938_v41 = vadd.f32 %v937_v37, %v878_v45 }
 0x350   :  { %v995_v12 = vpop.permute.xlu1 %994 }
 0x351   :  { %v997_v4 = vmul.f32 %v995_v12, %v992_v48  ;;  %v1175_v18 = vpop.permute.xlu2 %1174 }
 0x352   :  { %v1177_v60 = vmul.f32 %v1175_v18, %v1172_v47 }
 0x353   :  { %v998_v59 = vadd.f32 %v997_v4, %v938_v41 }
 0x355   :  { %v1058_v9 = vadd.f32 %v1057_v61, %v998_v59 }
 0x359   :  { %v1115_v2 = vpop.permute.xlu1 %1114  ;;  %v1311_v32 = vpop.permute.xlu2 %1310 }
 0x35a   :  { %v1117_v56 = vmul.f32 %v1115_v2, %v1112_v31 }
 0x35c   :  { %v1118_v25 = vadd.f32 %v1117_v56, %v1058_v9 }
 0x35e   :  { %v1178_v35 = vadd.f32 %v1177_v60, %v1118_v25 }
 0x360   :  { %v1238_v43 = vadd.f32 %v1237_v17, %v1178_v35 }
 0x362   :  { %v1295_v10 = vpop.permute.xlu1 %1294 }
 0x363   :  { %v1297_v29 = vmul.f32 %v1295_v10, %v1292_v30 }
 0x365   :  { %v1298_v44 = vadd.f32 %v1297_v29, %v1238_v43 }
 0x367   :  { %v1302_v57 = vadd.f32 %v1301_v15, %v1298_v44 }
 0x369   :  { %v1313_v49 = vmul.f32 %v1311_v32, %v1302_v57 }
 0x36b   :  { %v1315_v53 = vrot.slane %v1313_v49, 6 }
 0x36d   :  { %v1317_v13 = vsel %vm248_vm5, %v1315_v53, 0.0 }
 0x36e   :  { %1366 = vmatmul.msk.f32.vlgmr.msrb.gmra.mxu0 %vm121_vm1, %v1317_v13 }
 0x3eb   :  { %v1348_v62 = vpop.f32.mrf.mxu0 }
 0x3ec   :  { %v1349_v27 = vadd.f32 %v1463_v40, %v1348_v62 }
 0x3ee   :  { %1351 = vst [vmem:[%s2515_s7] sm:$0xff] %v1349_v27 }
 0x3ef   :  { %1356 = vsyncpa [#allocation3], 1 }
 0x3f0   :  { %1357 = vsyncpa [#allocation5], 1 }

</bundles_post_ra>
